<compile_context>
chip_gen: v7x
topology: tpu7x:2x2x1
jax: 0.10.0
libtpu: 0.0.40
codegen_flags: <defaults>
</compile_context>

<pallas_src>
import functools
import math

import jax
import jax.numpy as jnp
from jax.experimental import pallas as pl
from jax.experimental.pallas import tpu as pltpu


# ----------------------------------------------------------------------------
# small helpers
# ----------------------------------------------------------------------------
def _vmem_capacity_bytes() -> int:
    """Physical VMEM per TensorCore; conservative (v7x) fallback."""
    try:
        cap = getattr(pltpu.get_tpu_info(), "vmem_capacity_bytes", None)
        if cap:
            return int(cap)
    except Exception:
        pass
    return 64 * 1024 * 1024


def _sublane_align(dtype) -> int:
    # native packed sublane tile: 8 rows fp32, 16 rows bf16, 32 rows int8/fp8
    return {4: 8, 2: 16, 1: 32}.get(jnp.dtype(dtype).itemsize, 8)


def _pick_tile(dim: int, target: int, align: int) -> int:
    """Largest tile <= target aligned to `align`; the full dim if it fits.
    Prefers an exact divisor of `dim` so the trailing block is never
    mostly empty; otherwise falls back to a masked partial trailing block."""
    if dim <= target:
        return dim
    target = max(align, (target // align) * align)
    for cand in range(target, align - 1, -align):
        if dim % cand == 0:
            return cand
    return target


def _matmul_tiles(rows, K, N, dtype, tm_target=1024, tn_target=512):
    align_m = _sublane_align(dtype)
    cap = _vmem_capacity_bytes()
    # 64 MiB budget on 128 MiB parts (v5e/v6e), 32 MiB on v7x (64 MiB VMEM).
    budget = min(64 * 1024 * 1024, cap // 2)
    tn = _pick_tile(N, tn_target, 128)           # lane-dense output tiles
    w_bytes = 2 * 4 * K * tn                     # double-buffered weight block
    per_row = 2 * 4 * (2 * K + tn) + 4           # x blocks + fp32 temps + out
    tm_cap = max(align_m, (budget - w_bytes) // max(per_row, 1))
    tm = _pick_tile(rows, max(align_m, min(tm_target, tm_cap)), align_m)
    return tm, tn


def _compiler_params(n_grid_axes: int):
    cap = _vmem_capacity_bytes()
    return pltpu.CompilerParams(
        dimension_semantics=("parallel",) * n_grid_axes,
        vmem_limit_bytes=int(min(cap * 3 // 4, 128 * 1024 * 1024)),
    )


# ----------------------------------------------------------------------------
# kernels
# ----------------------------------------------------------------------------
def _rmsnorm_matmul_kernel(x_ref, g_ref, w_ref, o_ref, *, eps, inv_d):
    # fp32 norm (matches the torch module's .to(float32) compute) fused with an
    # MXU matmul (fp32 accumulate).  Garbage rows of a partial trailing block
    # stay row-local (x*x >= 0; the masked store drops those rows).
    x = x_ref[...].astype(jnp.float32)                      # (tm, K)
    ms = jnp.sum(x * x, axis=-1, keepdims=True) * inv_d     # (tm, 1)
    xn = x * jax.lax.rsqrt(ms + eps) * g_ref[...]           # gain resident fp32
    acc = jnp.dot(xn, w_ref[...].astype(jnp.float32),
                  preferred_element_type=jnp.float32)
    o_ref[...] = acc.astype(o_ref.dtype)


def _matmul_residual_kernel(x_ref, w_ref, r_ref, o_ref):
    acc = jnp.dot(x_ref[...].astype(jnp.float32),
                  w_ref[...].astype(jnp.float32),
                  preferred_element_type=jnp.float32)
    o_ref[...] = (acc + r_ref[...].astype(jnp.float32)).astype(o_ref.dtype)


def _swiglu_matmul_kernel(h_ref, w_ref, r_ref, o_ref):
    a = h_ref[:, 0, :].astype(jnp.float32)        # W1 half  (tm, dff)
    b = h_ref[:, 1, :].astype(jnp.float32)        # W3 half  (tm, dff)
    g = a * jax.nn.sigmoid(a) * b                 # silu(a) * b  (EUP logistic)
    acc = jnp.dot(g, w_ref[...].astype(jnp.float32),
                  preferred_element_type=jnp.float32)
    o_ref[...] = (acc + r_ref[...].astype(jnp.float32)).astype(o_ref.dtype)


def _attention_kernel(q_ref, k_ref, v_ref, cos_ref, sin_ref, pm_ref, o_ref, *,
                      scale, half):
    # One (batch, head) per grid step; the whole (S, S) score tile lives in
    # VMEM.  TODO(synk): for long sequences switch to a flash-style streaming
    # KV loop instead of materializing (S, S).
    q = q_ref[0, 0].astype(jnp.float32)           # (S, Dh)
    k = k_ref[0, 0].astype(jnp.float32)
    v = v_ref[0, 0].astype(jnp.float32)
    cos = cos_ref[...]                            # (S, Dh)
    sin = sin_ref[...]                            # sign-folded: [-sin | +sin]

    def rope(t):
        # rotate-half form; q/k arrive pre-permuted to [even pairs | odd pairs]
        # (the permutation is folded into the QKV weight), so this reproduces
        # the reference's interleaved RoPE exactly.
        t_swap = jnp.concatenate([t[:, half:], t[:, :half]], axis=-1)
        return t * cos + t_swap * sin

    q = rope(q)
    k = rope(k)
    s = jax.lax.dot_general(q, k, (((1,), (1,)), ((), ())),
                            preferred_element_type=jnp.float32) * scale  # (S,S)
    n = s.shape[0]
    row = jax.lax.broadcasted_iota(jnp.int32, (n, n), 0)
    col = jax.lax.broadcasted_iota(jnp.int32, (n, n), 1)
    keep = jnp.logical_and(row >= col, pm_ref[0] > 0.5)   # causal & key padding
    s = jnp.where(keep, s, -jnp.inf)
    m = jnp.max(s, axis=-1, keepdims=True)
    p = jnp.exp(s - m)
    w = p / jnp.sum(p, axis=-1, keepdims=True)
    o_ref[0, 0] = jnp.dot(w, v, preferred_element_type=jnp.float32
                          ).astype(o_ref.dtype)


# ----------------------------------------------------------------------------
# pallas_call wrappers
# ----------------------------------------------------------------------------
def rmsnorm_matmul(x, gain, w_t, eps=1e-5):
    """RMSNorm(x) @ w_t   with w_t = W.T stored as (K, N)."""
    rows, K = x.shape
    K2, N = w_t.shape
    assert K == K2
    gain2d = gain.reshape(1, K).astype(jnp.float32)
    tm, tn = _matmul_tiles(rows, K, N, x.dtype)
    grid = (pl.cdiv(rows, tm), pl.cdiv(N, tn))
    kernel = functools.partial(_rmsnorm_matmul_kernel,
                               eps=float(eps), inv_d=1.0 / K)
    return pl.pallas_call(
        kernel,
        out_shape=jax.ShapeDtypeStruct((rows, N), x.dtype),
        grid_spec=pltpu.PrefetchScalarGridSpec(
            num_scalar_prefetch=0,
            grid=grid,
            in_specs=[
                pl.BlockSpec((tm, K), lambda i, j: (i, 0)),   # x rows, full K
                pl.BlockSpec((1, K), lambda i, j: (0, 0)),    # gain, resident
                pl.BlockSpec((K, tn), lambda i, j: (0, j)),   # weight columns
            ],
            out_specs=pl.BlockSpec((tm, tn), lambda i, j: (i, j)),
        ),
        compiler_params=_compiler_params(2),
    )(x, gain2d, w_t)


def matmul_residual(x, w_t, residual):
    """x @ w_t + residual   (residual add fused into the epilogue)."""
    rows, K = x.shape
    K2, N = w_t.shape
    assert K == K2 and residual.shape == (rows, N)
    tm, tn = _matmul_tiles(rows, K, N, x.dtype)
    grid = (pl.cdiv(rows, tm), pl.cdiv(N, tn))
    return pl.pallas_call(
        _matmul_residual_kernel,
        out_shape=jax.ShapeDtypeStruct((rows, N), residual.dtype),
        grid_spec=pltpu.PrefetchScalarGridSpec(
            num_scalar_prefetch=0,
            grid=grid,
            in_specs=[
                pl.BlockSpec((tm, K), lambda i, j: (i, 0)),
                pl.BlockSpec((K, tn), lambda i, j: (0, j)),
                pl.BlockSpec((tm, tn), lambda i, j: (i, j)),
            ],
            out_specs=pl.BlockSpec((tm, tn), lambda i, j: (i, j)),
        ),
        compiler_params=_compiler_params(2),
    )(x, w_t, residual)


def swiglu_matmul_residual(h, w2_t, residual):
    """(silu(h[:,0]) * h[:,1]) @ w2_t + residual.   h: (rows, 2, dff)."""
    rows, two, dff = h.shape
    assert two == 2
    dff2, N = w2_t.shape
    assert dff2 == dff and residual.shape == (rows, N)
    tm, tn = _matmul_tiles(rows, 2 * dff, N, h.dtype)
    grid = (pl.cdiv(rows, tm), pl.cdiv(N, tn))
    return pl.pallas_call(
        _swiglu_matmul_kernel,
        out_shape=jax.ShapeDtypeStruct((rows, N), residual.dtype),
        grid_spec=pltpu.PrefetchScalarGridSpec(
            num_scalar_prefetch=0,
            grid=grid,
            in_specs=[
                pl.BlockSpec((tm, 2, dff), lambda i, j: (i, 0, 0)),
                pl.BlockSpec((dff, tn), lambda i, j: (0, j)),
                pl.BlockSpec((tm, tn), lambda i, j: (i, j)),
            ],
            out_specs=pl.BlockSpec((tm, tn), lambda i, j: (i, j)),
        ),
        compiler_params=_compiler_params(2),
    )(h, w2_t, residual)


def causal_rope_attention(q, k, v, cos, sin, padding_mask, scale):
    """q/k pre-permuted to [even|odd] head layout, v unpermuted.
    q/k/v: (B, H, S, Dh); cos/sin: (S, Dh); padding_mask: (B, 1, S) fp32."""
    B, H, S, Dh = q.shape
    kernel = functools.partial(_attention_kernel,
                               scale=float(scale), half=Dh // 2)
    qkv_spec = pl.BlockSpec((1, 1, S, Dh), lambda b, h: (b, h, 0, 0))
    rope_spec = pl.BlockSpec((S, Dh), lambda b, h: (0, 0))
    return pl.pallas_call(
        kernel,
        out_shape=jax.ShapeDtypeStruct((B, H, S, Dh), q.dtype),
        grid_spec=pltpu.PrefetchScalarGridSpec(
            num_scalar_prefetch=0,
            grid=(B, H),
            in_specs=[qkv_spec, qkv_spec, qkv_spec, rope_spec, rope_spec,
                      pl.BlockSpec((1, 1, S), lambda b, h: (b, 0, 0))],
            out_specs=pl.BlockSpec((1, 1, S, Dh), lambda b, h: (b, h, 0, 0)),
        ),
        compiler_params=_compiler_params(2),
    )(q, k, v, cos, sin, padding_mask)


# ----------------------------------------------------------------------------
# parameter preparation + full forward
# ----------------------------------------------------------------------------
def _rope_tables(head_dim, max_seq_len, theta=10000.0):
    i = jnp.arange(head_dim // 2, dtype=jnp.float32)
    inv_freq = theta ** (-2.0 * i / head_dim)
    ang = jnp.arange(max_seq_len, dtype=jnp.float32)[:, None] * inv_freq[None, :]
    cos, sin = jnp.cos(ang), jnp.sin(ang)
    cos_cat = jnp.concatenate([cos, cos], axis=-1)          # (S_max, Dh)
    sin_signed = jnp.concatenate([-sin, sin], axis=-1)      # (S_max, Dh)
    return cos_cat, sin_signed


def _deinterleave_qk_rows(w_qkv, num_heads, head_dim):
    """Permute q/k output rows of the fused QKV weight so each head's features
    come out as [even pairs | odd pairs]; the rotate-half RoPE in the attention
    kernel then equals the reference's interleaved RoPE (one-time weight prep)."""
    perm = jnp.concatenate([jnp.arange(0, head_dim, 2),
                            jnp.arange(1, head_dim, 2)])
    hd = num_heads * head_dim

    def section(w):
        return w.reshape(num_heads, head_dim, -1)[:, perm, :].reshape(hd, -1)

    return jnp.concatenate([section(w_qkv[:hd]), section(w_qkv[hd:2 * hd]),
                            w_qkv[2 * hd:]], axis=0)


def prepare_params(raw, *, num_heads, max_seq_len):
    """Torch-layout weights (out, in) -> kernel layout: pre-transposed (in, out)
    with the q/k de-interleave folded into the QKV weight."""
    emb = raw["embeddings"]
    E = emb.shape[1]
    head_dim = E // num_heads
    cos, sin = _rope_tables(head_dim, max_seq_len)
    layers = []
    for lyr in raw["layers"]:
        wqkv = _deinterleave_qk_rows(lyr["w_qkv"], num_heads, head_dim)
        layers.append(dict(
            attn_norm_gain=lyr["attn_gain"],
            wqkv_t=jnp.transpose(wqkv),
            wo_t=jnp.transpose(lyr["w_o"]),
            ffn_norm_gain=lyr["ffn_gain"],
            w13_t=jnp.transpose(lyr["w13"]),
            w2_t=jnp.transpose(lyr["w2"]),
        ))
    return dict(embeddings=emb, rope_cos=cos, rope_sin=sin, layers=layers,
                final_norm_gain=raw["final_gain"],
                wout_t=jnp.transpose(raw["w_out"]))


def transformer_forward(params, input_ids, padding_mask, *, num_heads, eps=1e-5):
    B, S = input_ids.shape
    emb = params["embeddings"]
    vocab, E = emb.shape
    head_dim = E // num_heads
    scale = 1.0 / math.sqrt(head_dim)

    # TODO(synk): token-id gather is data-dependent; left to XLA (jnp.take)
    # rather than a Pallas scalar-prefetch gather.
    x = jnp.take(emb, input_ids.reshape(-1), axis=0)        # (B*S, E)

    cos = params["rope_cos"][:S]
    sin = params["rope_sin"][:S]
    pm = padding_mask.astype(jnp.float32).reshape(B, 1, S)

    for lyr in params["layers"]:
        # attention sub-block: pre-norm fused into the QKV projection
        qkv = rmsnorm_matmul(x, lyr["attn_norm_gain"], lyr["wqkv_t"], eps)
        qkv = qkv.reshape(B, S, 3, num_heads, head_dim).transpose(2, 0, 3, 1, 4)
        attn = causal_rope_attention(qkv[0], qkv[1], qkv[2], cos, sin, pm, scale)
        attn = attn.transpose(0, 2, 1, 3).reshape(B * S, E)
        # W_O projection with the residual add fused into the epilogue
        x = matmul_residual(attn, lyr["wo_t"], x)
        # FFN sub-block: pre-norm fused into W1_W3; SwiGLU + residual into W2
        dff = lyr["w2_t"].shape[0]
        h = rmsnorm_matmul(x, lyr["ffn_norm_gain"], lyr["w13_t"], eps)
        x = swiglu_matmul_residual(h.reshape(B * S, 2, dff), lyr["w2_t"], x)

    # pre_output_norm fused into the vocab projection
    logits = rmsnorm_matmul(x, params["final_norm_gain"], params["wout_t"], eps)
    return logits.reshape(B, S, vocab)


# ----------------------------------------------------------------------------
# pure-JAX reference (mirrors the PyTorch module exactly)
# ----------------------------------------------------------------------------
def _ref_rmsnorm(x, gain, eps=1e-5):
    xf = x.astype(jnp.float32)
    rms = jnp.sqrt(jnp.mean(xf * xf, axis=-1, keepdims=True) + eps)
    return (xf / rms) * gain


def _ref_rope(x, cos, sin):
    *lead, S, Dh = x.shape
    xp = x.reshape(*lead, S, Dh // 2, 2)
    x0, x1 = xp[..., 0], xp[..., 1]
    r0 = x0 * cos - x1 * sin
    r1 = x0 * sin + x1 * cos
    return jnp.stack([r0, r1], axis=-1).reshape(*lead, S, Dh)


def ref_transformer(raw, input_ids, padding_mask, *, num_heads, eps=1e-5,
                    theta=10000.0):
    B, S = input_ids.shape
    emb = raw["embeddings"]
    E = emb.shape[1]
    Dh = E // num_heads
    x = emb[input_ids]
    i = jnp.arange(Dh // 2, dtype=jnp.float32)
    inv_freq = theta ** (-2.0 * i / Dh)
    ang = jnp.arange(S, dtype=jnp.float32)[:, None] * inv_freq[None, :]
    cos, sin = jnp.cos(ang), jnp.sin(ang)
    causal = jnp.tril(jnp.ones((S, S), jnp.float32))
    pad = padding_mask.astype(jnp.float32)
    for lyr in raw["layers"]:
        xn = _ref_rmsnorm(x, lyr["attn_gain"], eps)
        qkv = xn @ lyr["w_qkv"].T
        q, k, v = jnp.split(qkv, 3, axis=-1)

        def heads(t):
            return t.reshape(B, S, num_heads, Dh).transpose(0, 2, 1, 3)

        q, k, v = heads(q), heads(k), heads(v)
        q = _ref_rope(q, cos, sin)
        k = _ref_rope(k, cos, sin)
        s = (q @ jnp.swapaxes(k, -1, -2)) / math.sqrt(Dh)
        mask = (causal * pad[:, None, :])[:, None, :, :]
        s = jnp.where(mask == 0, -jnp.inf, s)
        w = jax.nn.softmax(s, axis=-1)
        a = (w @ v).transpose(0, 2, 1, 3).reshape(B, S, E)
        x = a @ lyr["w_o"].T + x
        xn = _ref_rmsnorm(x, lyr["ffn_gain"], eps)
        h = xn @ lyr["w13"].T
        dff = lyr["w2"].shape[1]
        x = (jax.nn.silu(h[..., :dff]) * h[..., dff:]) @ lyr["w2"].T + x
    xn = _ref_rmsnorm(x, raw["final_gain"], eps)
    return xn @ raw["w_out"].T


# ----------------------------------------------------------------------------
# demo / correctness check
# ----------------------------------------------------------------------------
if __name__ == "__main__":
    vocab_size, max_seq_len = 64, 8
    embedding_dim, num_layers, num_heads = 32, 2, 2
    batch, seq = 2, 8
    dff = int(round(8 * embedding_dim / 3 / 64) * 64)     # PosWiseFFN sizing

    key = jax.random.PRNGKey(0)
    keys = iter(jax.random.split(key, 32))

    def init(shape, std):
        return std * jax.random.normal(next(keys), shape, dtype=jnp.float32)

    raw = dict(
        embeddings=init((vocab_size, embedding_dim), 1.0),
        final_gain=1.0 + 0.1 * init((embedding_dim,), 1.0),
        w_out=init((vocab_size, embedding_dim), 0.02),
        layers=[],
    )
    for _ in range(num_layers):
        raw["layers"].append(dict(
            attn_gain=1.0 + 0.1 * init((embedding_dim,), 1.0),
            w_qkv=init((3 * embedding_dim, embedding_dim),
                       math.sqrt(2.0 / (4 * embedding_dim))),
            w_o=init((embedding_dim, embedding_dim),
                     math.sqrt(2.0 / (2 * embedding_dim))),
            ffn_gain=1.0 + 0.1 * init((embedding_dim,), 1.0),
            w13=init((2 * dff, embedding_dim),
                     math.sqrt(2.0 / (embedding_dim + 2 * dff))),
            w2=init((embedding_dim, dff),
                    math.sqrt(2.0 / (embedding_dim + dff))),
        ))

    input_ids = jax.random.randint(next(keys), (batch, seq), 0, vocab_size)
    padding_mask = jnp.ones((batch, seq), jnp.float32).at[1, 6:].set(0.0)

    params = prepare_params(raw, num_heads=num_heads, max_seq_len=max_seq_len)
    fwd = jax.jit(functools.partial(transformer_forward, num_heads=num_heads))
    logits = jax.block_until_ready(fwd(params, input_ids, padding_mask))

    ref = ref_transformer(raw, input_ids, padding_mask, num_heads=num_heads)

    assert logits.shape == (batch, seq, vocab_size)
    assert logits.dtype == jnp.float32
    assert not bool(jnp.any(jnp.isnan(logits)))
    err = float(jnp.max(jnp.abs(logits - ref)))
    assert err < 5e-3, f"max abs err {err}"
    print("KERNEL_OK")
</pallas_src>

<mosaic_0001>
module attributes {stable_mosaic.version = 11 : i64} {
  func.func @_rmsnorm_matmul_kernel(%arg0: i32, %arg1: i32, %arg2: memref<16x32xf32, #tpu.memory_space<vmem>>, %arg3: memref<1x32xf32, #tpu.memory_space<vmem>>, %arg4: memref<32x96xf32, #tpu.memory_space<vmem>>, %arg5: memref<16x96xf32, #tpu.memory_space<vmem>>) attributes {dimension_semantics = [#tpu.dimension_semantics<parallel>, #tpu.dimension_semantics<parallel>], iteration_bounds = array<i64: 1, 1>, scalar_prefetch = 0 : i64, scratch_operands = 0 : i64, tpu.core_type = #tpu.core_type<tc>, window_params = [{transform_indices = @transform_0, window_bounds = array<i64: 16, 32>}, {pipeline_mode = #tpu.pipeline_mode<synchronous>, transform_indices = @transform_1, window_bounds = array<i64: 1, 32>}, {transform_indices = @transform_2, window_bounds = array<i64: 32, 96>}, {transform_indices = @transform_3, window_bounds = array<i64: 16, 96>}]} {
    %c0 = arith.constant 0 : index
    %c0_0 = arith.constant 0 : index
    %0 = vector.load %arg2[%c0, %c0_0] : memref<16x32xf32, #tpu.memory_space<vmem>>, vector<16x32xf32>
    %1 = arith.mulf %0, %0 : vector<16x32xf32>
    %cst = arith.constant dense<0.000000e+00> : vector<16xf32>
    %2 = vector.multi_reduction <add>, %1, %cst [1] : vector<16x32xf32> to vector<16xf32>
    %3 = vector.shape_cast %2 : vector<16xf32> to vector<16x1xf32>
    %cst_1 = arith.constant 3.125000e-02 : f32
    %4 = vector.broadcast %cst_1 : f32 to vector<16x1xf32>
    %5 = arith.mulf %3, %4 : vector<16x1xf32>
    %cst_2 = arith.constant 9.99999974E-6 : f32
    %6 = vector.broadcast %cst_2 : f32 to vector<16x1xf32>
    %7 = arith.addf %5, %6 : vector<16x1xf32>
    %8 = math.rsqrt %7 : vector<16x1xf32>
    %9 = vector.broadcast %8 : vector<16x1xf32> to vector<16x32xf32>
    %10 = arith.mulf %0, %9 : vector<16x32xf32>
    %c0_3 = arith.constant 0 : index
    %c0_4 = arith.constant 0 : index
    %11 = vector.load %arg3[%c0_3, %c0_4] : memref<1x32xf32, #tpu.memory_space<vmem>>, vector<1x32xf32>
    %12 = vector.broadcast %11 : vector<1x32xf32> to vector<16x32xf32>
    %13 = arith.mulf %10, %12 : vector<16x32xf32>
    %c0_5 = arith.constant 0 : index
    %c0_6 = arith.constant 0 : index
    %14 = vector.load %arg4[%c0_5, %c0_6] : memref<32x96xf32, #tpu.memory_space<vmem>>, vector<32x96xf32>
    %cst_7 = arith.constant dense<0.000000e+00> : vector<16x96xf32>
    %15 = tpu.matmul %13, %14, %cst_7 {dimension_numbers = #tpu.dot_dimension_numbers<[1], [0], [0], [1], [0, 0, 1, 1], [], []>} : vector<16x32xf32>, vector<32x96xf32>, vector<16x96xf32> -> vector<16x96xf32>
    %c0_8 = arith.constant 0 : index
    %c0_9 = arith.constant 0 : index
    %16 = vector.load %arg5[%c0_8, %c0_9] : memref<16x96xf32, #tpu.memory_space<vmem>>, vector<16x96xf32>
    tpu.vector_store %arg5[%c0_8, %c0_9], %15 {strides = array<i32>} : memref<16x96xf32, #tpu.memory_space<vmem>>, vector<16x96xf32>,
    return
  }
  func.func @transform_0(%arg0: i32, %arg1: i32) -> (i32, i32) {
    %c0_i32 = arith.constant 0 : i32
    %c0_i32_0 = arith.constant 0 : i32
    return %arg0, %c0_i32 : i32, i32
  }
  func.func @transform_1(%arg0: i32, %arg1: i32) -> (i32, i32) {
    %c0_i32 = arith.constant 0 : i32
    %c0_i32_0 = arith.constant 0 : i32
    %c0_i32_1 = arith.constant 0 : i32
    return %c0_i32, %c0_i32_0 : i32, i32
  }
  func.func @transform_2(%arg0: i32, %arg1: i32) -> (i32, i32) {
    %c0_i32 = arith.constant 0 : i32
    %c0_i32_0 = arith.constant 0 : i32
    return %c0_i32, %arg1 : i32, i32
  }
  func.func @transform_3(%arg0: i32, %arg1: i32) -> (i32, i32) {
    %c0_i32 = arith.constant 0 : i32
    return %arg0, %arg1 : i32, i32
  }
}

module attributes {stable_mosaic.version = 11 : i64} {
  func.func @_attention_kernel(%arg0: i32, %arg1: i32, %arg2: memref<1x1x8x16xf32, #tpu.memory_space<vmem>>, %arg3: memref<1x1x8x16xf32, #tpu.memory_space<vmem>>, %arg4: memref<1x1x8x16xf32, #tpu.memory_space<vmem>>, %arg5: memref<8x16xf32, #tpu.memory_space<vmem>>, %arg6: memref<8x16xf32, #tpu.memory_space<vmem>>, %arg7: memref<1x1x8xf32, #tpu.memory_space<vmem>>, %arg8: memref<1x1x8x16xf32, #tpu.memory_space<vmem>>) attributes {dimension_semantics = [#tpu.dimension_semantics<parallel>, #tpu.dimension_semantics<parallel>], iteration_bounds = array<i64: 2, 2>, scalar_prefetch = 0 : i64, scratch_operands = 0 : i64, tpu.core_type = #tpu.core_type<tc>, window_params = [{transform_indices = @transform_0, window_bounds = array<i64: 1, 1, 8, 16>}, {transform_indices = @transform_1, window_bounds = array<i64: 1, 1, 8, 16>}, {transform_indices = @transform_2, window_bounds = array<i64: 1, 1, 8, 16>}, {pipeline_mode = #tpu.pipeline_mode<synchronous>, transform_indices = @transform_3, window_bounds = array<i64: 8, 16>}, {pipeline_mode = #tpu.pipeline_mode<synchronous>, transform_indices = @transform_4, window_bounds = array<i64: 8, 16>}, {transform_indices = @transform_5, window_bounds = array<i64: 1, 1, 8>}, {transform_indices = @transform_6, window_bounds = array<i64: 1, 1, 8, 16>}]} {
    %c0 = arith.constant 0 : index
    %c0_0 = arith.constant 0 : index
    %c0_1 = arith.constant 0 : index
    %c0_2 = arith.constant 0 : index
    %0 = vector.load %arg2[%c0, %c0_0, %c0_1, %c0_2] : memref<1x1x8x16xf32, #tpu.memory_space<vmem>>, vector<1x1x8x16xf32>
    %1 = vector.shape_cast %0 : vector<1x1x8x16xf32> to vector<8x16xf32>
    %c0_3 = arith.constant 0 : index
    %c0_4 = arith.constant 0 : index
    %c0_5 = arith.constant 0 : index
    %c0_6 = arith.constant 0 : index
    %2 = vector.load %arg3[%c0_3, %c0_4, %c0_5, %c0_6] : memref<1x1x8x16xf32, #tpu.memory_space<vmem>>, vector<1x1x8x16xf32>
    %3 = vector.shape_cast %2 : vector<1x1x8x16xf32> to vector<8x16xf32>
    %c0_7 = arith.constant 0 : index
    %c0_8 = arith.constant 0 : index
    %c0_9 = arith.constant 0 : index
    %c0_10 = arith.constant 0 : index
    %4 = vector.load %arg4[%c0_7, %c0_8, %c0_9, %c0_10] : memref<1x1x8x16xf32, #tpu.memory_space<vmem>>, vector<1x1x8x16xf32>
    %5 = vector.shape_cast %4 : vector<1x1x8x16xf32> to vector<8x16xf32>
    %c0_11 = arith.constant 0 : index
    %c0_12 = arith.constant 0 : index
    %6 = vector.load %arg5[%c0_11, %c0_12] : memref<8x16xf32, #tpu.memory_space<vmem>>, vector<8x16xf32>
    %c0_13 = arith.constant 0 : index
    %c0_14 = arith.constant 0 : index
    %7 = vector.load %arg6[%c0_13, %c0_14] : memref<8x16xf32, #tpu.memory_space<vmem>>, vector<8x16xf32>
    %8 = vector.extract_strided_slice %1 {offsets = [0, 8], sizes = [8, 8], strides = [1, 1]} : vector<8x16xf32> to vector<8x8xf32>
    %9 = vector.extract_strided_slice %1 {offsets = [0, 0], sizes = [8, 8], strides = [1, 1]} : vector<8x16xf32> to vector<8x8xf32>
    %10 = tpu.concatenate %8, %9 in 1 : vector<8x8xf32>, vector<8x8xf32> -> vector<8x16xf32>
    %11 = arith.mulf %1, %6 : vector<8x16xf32>
    %12 = arith.mulf %10, %7 : vector<8x16xf32>
    %13 = arith.addf %11, %12 : vector<8x16xf32>
    %14 = vector.extract_strided_slice %3 {offsets = [0, 8], sizes = [8, 8], strides = [1, 1]} : vector<8x16xf32> to vector<8x8xf32>
    %15 = vector.extract_strided_slice %3 {offsets = [0, 0], sizes = [8, 8], strides = [1, 1]} : vector<8x16xf32> to vector<8x8xf32>
    %16 = tpu.concatenate %14, %15 in 1 : vector<8x8xf32>, vector<8x8xf32> -> vector<8x16xf32>
    %17 = arith.mulf %3, %6 : vector<8x16xf32>
    %18 = arith.mulf %16, %7 : vector<8x16xf32>
    %19 = arith.addf %17, %18 : vector<8x16xf32>
    %cst = arith.constant dense<0.000000e+00> : vector<8x8xf32>
    %20 = tpu.matmul %13, %19, %cst {dimension_numbers = #tpu.dot_dimension_numbers<[1], [1], [0], [0], [0, 0, 1, 0], [], []>} : vector<8x16xf32>, vector<8x16xf32>, vector<8x8xf32> -> vector<8x8xf32>
    %cst_15 = arith.constant 2.500000e-01 : f32
    %21 = vector.broadcast %cst_15 : f32 to vector<8x8xf32>
    %22 = arith.mulf %20, %21 : vector<8x8xf32>
    %23 = tpu.iota {dimensions = array<i32: 0>} : vector<8x8xi32>
    %24 = tpu.iota {dimensions = array<i32: 1>} : vector<8x8xi32>
    %25 = arith.cmpi sge, %23, %24 : vector<8x8xi32>
    %c0_16 = arith.constant 0 : index
    %c0_17 = arith.constant 0 : index
    %c0_18 = arith.constant 0 : index
    %26 = vector.load %arg7[%c0_16, %c0_17, %c0_18] : memref<1x1x8xf32, #tpu.memory_space<vmem>>, vector<1x1x8xf32>
    %27 = vector.shape_cast %26 : vector<1x1x8xf32> to vector<1x8xf32>
    %cst_19 = arith.constant 5.000000e-01 : f32
    %28 = vector.broadcast %cst_19 : f32 to vector<1x8xf32>
    %29 = arith.cmpf ogt, %27, %28 : vector<1x8xf32>
    %30 = vector.broadcast %29 : vector<1x8xi1> to vector<8x8xi1>
    %31 = arith.andi %25, %30 : vector<8x8xi1>
    %cst_20 = arith.constant 0xFF800000 : f32
    %32 = vector.broadcast %cst_20 : f32 to vector<8x8xf32>
    %33 = arith.select %31, %22, %32 : vector<8x8xi1>, vector<8x8xf32>
    %cst_21 = arith.constant dense<0xFF800000> : vector<8xf32>
    %34 = vector.multi_reduction <maximumf>, %33, %cst_21 [1] : vector<8x8xf32> to vector<8xf32>
    %35 = vector.shape_cast %34 : vector<8xf32> to vector<8x1xf32>
    %36 = vector.broadcast %35 : vector<8x1xf32> to vector<8x8xf32>
    %37 = arith.subf %33, %36 : vector<8x8xf32>
    %38 = math.exp %37 : vector<8x8xf32>
    %cst_22 = arith.constant dense<0.000000e+00> : vector<8xf32>
    %39 = vector.multi_reduction <add>, %38, %cst_22 [1] : vector<8x8xf32> to vector<8xf32>
    %40 = vector.shape_cast %39 : vector<8xf32> to vector<8x1xf32>
    %41 = vector.broadcast %40 : vector<8x1xf32> to vector<8x8xf32>
    %42 = arith.divf %38, %41 : vector<8x8xf32>
    %cst_23 = arith.constant dense<0.000000e+00> : vector<8x16xf32>
    %43 = tpu.matmul %42, %5, %cst_23 {dimension_numbers = #tpu.dot_dimension_numbers<[1], [0], [0], [1], [0, 0, 1, 1], [], []>} : vector<8x8xf32>, vector<8x16xf32>, vector<8x16xf32> -> vector<8x16xf32>
    %c0_24 = arith.constant 0 : index
    %c0_25 = arith.constant 0 : index
    %c0_26 = arith.constant 0 : index
    %c0_27 = arith.constant 0 : index
    %44 = vector.load %arg8[%c0_24, %c0_25, %c0_26, %c0_27] : memref<1x1x8x16xf32, #tpu.memory_space<vmem>>, vector<1x1x8x16xf32>
    %45 = vector.shape_cast %44 : vector<1x1x8x16xf32> to vector<8x16xf32>
    %46 = vector.shape_cast %43 : vector<8x16xf32> to vector<1x1x8x16xf32>
    tpu.vector_store %arg8[%c0_24, %c0_25, %c0_26, %c0_27], %46 {strides = array<i32>} : memref<1x1x8x16xf32, #tpu.memory_space<vmem>>, vector<1x1x8x16xf32>,
    return
  }
  func.func @transform_0(%arg0: i32, %arg1: i32) -> (i32, i32, i32, i32) {
    %c0_i32 = arith.constant 0 : i32
    %c0_i32_0 = arith.constant 0 : i32
    %c0_i32_1 = arith.constant 0 : i32
    return %arg0, %arg1, %c0_i32, %c0_i32_0 : i32, i32, i32, i32
  }
  func.func @transform_1(%arg0: i32, %arg1: i32) -> (i32, i32, i32, i32) {
    %c0_i32 = arith.constant 0 : i32
    %c0_i32_0 = arith.constant 0 : i32
    %c0_i32_1 = arith.constant 0 : i32
    return %arg0, %arg1, %c0_i32, %c0_i32_0 : i32, i32, i32, i32
  }
  func.func @transform_2(%arg0: i32, %arg1: i32) -> (i32, i32, i32, i32) {
    %c0_i32 = arith.constant 0 : i32
    %c0_i32_0 = arith.constant 0 : i32
    %c0_i32_1 = arith.constant 0 : i32
    return %arg0, %arg1, %c0_i32, %c0_i32_0 : i32, i32, i32, i32
  }
  func.func @transform_3(%arg0: i32, %arg1: i32) -> (i32, i32) {
    %c0_i32 = arith.constant 0 : i32
    %c0_i32_0 = arith.constant 0 : i32
    %c0_i32_1 = arith.constant 0 : i32
    return %c0_i32, %c0_i32_0 : i32, i32
  }
  func.func @transform_4(%arg0: i32, %arg1: i32) -> (i32, i32) {
    %c0_i32 = arith.constant 0 : i32
    %c0_i32_0 = arith.constant 0 : i32
    %c0_i32_1 = arith.constant 0 : i32
    return %c0_i32, %c0_i32_0 : i32, i32
  }
  func.func @transform_5(%arg0: i32, %arg1: i32) -> (i32, i32, i32) {
    %c0_i32 = arith.constant 0 : i32
    %c0_i32_0 = arith.constant 0 : i32
    %c0_i32_1 = arith.constant 0 : i32
    return %arg0, %c0_i32, %c0_i32_0 : i32, i32, i32
  }
  func.func @transform_6(%arg0: i32, %arg1: i32) -> (i32, i32, i32, i32) {
    %c0_i32 = arith.constant 0 : i32
    %c0_i32_0 = arith.constant 0 : i32
    %c0_i32_1 = arith.constant 0 : i32
    return %arg0, %arg1, %c0_i32, %c0_i32_0 : i32, i32, i32, i32
  }
}

module attributes {stable_mosaic.version = 11 : i64} {
  func.func @_matmul_residual_kernel(%arg0: i32, %arg1: i32, %arg2: memref<16x32xf32, #tpu.memory_space<vmem>>, %arg3: memref<32x32xf32, #tpu.memory_space<vmem>>, %arg4: memref<16x32xf32, #tpu.memory_space<vmem>>, %arg5: memref<16x32xf32, #tpu.memory_space<vmem>>) attributes {dimension_semantics = [#tpu.dimension_semantics<parallel>, #tpu.dimension_semantics<parallel>], iteration_bounds = array<i64: 1, 1>, scalar_prefetch = 0 : i64, scratch_operands = 0 : i64, tpu.core_type = #tpu.core_type<tc>, window_params = [{transform_indices = @transform_0, window_bounds = array<i64: 16, 32>}, {transform_indices = @transform_1, window_bounds = array<i64: 32, 32>}, {transform_indices = @transform_2, window_bounds = array<i64: 16, 32>}, {transform_indices = @transform_3, window_bounds = array<i64: 16, 32>}]} {
    %c0 = arith.constant 0 : index
    %c0_0 = arith.constant 0 : index
    %0 = vector.load %arg2[%c0, %c0_0] : memref<16x32xf32, #tpu.memory_space<vmem>>, vector<16x32xf32>
    %c0_1 = arith.constant 0 : index
    %c0_2 = arith.constant 0 : index
    %1 = vector.load %arg3[%c0_1, %c0_2] : memref<32x32xf32, #tpu.memory_space<vmem>>, vector<32x32xf32>
    %cst = arith.constant dense<0.000000e+00> : vector<16x32xf32>
    %2 = tpu.matmul %0, %1, %cst {dimension_numbers = #tpu.dot_dimension_numbers<[1], [0], [0], [1], [0, 0, 1, 1], [], []>} : vector<16x32xf32>, vector<32x32xf32>, vector<16x32xf32> -> vector<16x32xf32>
    %c0_3 = arith.constant 0 : index
    %c0_4 = arith.constant 0 : index
    %3 = vector.load %arg4[%c0_3, %c0_4] : memref<16x32xf32, #tpu.memory_space<vmem>>, vector<16x32xf32>
    %4 = arith.addf %2, %3 : vector<16x32xf32>
    %c0_5 = arith.constant 0 : index
    %c0_6 = arith.constant 0 : index
    %5 = vector.load %arg5[%c0_5, %c0_6] : memref<16x32xf32, #tpu.memory_space<vmem>>, vector<16x32xf32>
    tpu.vector_store %arg5[%c0_5, %c0_6], %4 {strides = array<i32>} : memref<16x32xf32, #tpu.memory_space<vmem>>, vector<16x32xf32>,
    return
  }
  func.func @transform_0(%arg0: i32, %arg1: i32) -> (i32, i32) {
    %c0_i32 = arith.constant 0 : i32
    %c0_i32_0 = arith.constant 0 : i32
    return %arg0, %c0_i32 : i32, i32
  }
  func.func @transform_1(%arg0: i32, %arg1: i32) -> (i32, i32) {
    %c0_i32 = arith.constant 0 : i32
    %c0_i32_0 = arith.constant 0 : i32
    return %c0_i32, %arg1 : i32, i32
  }
  func.func @transform_2(%arg0: i32, %arg1: i32) -> (i32, i32) {
    %c0_i32 = arith.constant 0 : i32
    return %arg0, %arg1 : i32, i32
  }
  func.func @transform_3(%arg0: i32, %arg1: i32) -> (i32, i32) {
    %c0_i32 = arith.constant 0 : i32
    return %arg0, %arg1 : i32, i32
  }
}

module attributes {stable_mosaic.version = 11 : i64} {
  func.func @_rmsnorm_matmul_kernel(%arg0: i32, %arg1: i32, %arg2: memref<16x32xf32, #tpu.memory_space<vmem>>, %arg3: memref<1x32xf32, #tpu.memory_space<vmem>>, %arg4: memref<32x128xf32, #tpu.memory_space<vmem>>, %arg5: memref<16x128xf32, #tpu.memory_space<vmem>>) attributes {dimension_semantics = [#tpu.dimension_semantics<parallel>, #tpu.dimension_semantics<parallel>], iteration_bounds = array<i64: 1, 1>, scalar_prefetch = 0 : i64, scratch_operands = 0 : i64, tpu.core_type = #tpu.core_type<tc>, window_params = [{transform_indices = @transform_0, window_bounds = array<i64: 16, 32>}, {pipeline_mode = #tpu.pipeline_mode<synchronous>, transform_indices = @transform_1, window_bounds = array<i64: 1, 32>}, {transform_indices = @transform_2, window_bounds = array<i64: 32, 128>}, {transform_indices = @transform_3, window_bounds = array<i64: 16, 128>}]} {
    %c0 = arith.constant 0 : index
    %c0_0 = arith.constant 0 : index
    %0 = vector.load %arg2[%c0, %c0_0] : memref<16x32xf32, #tpu.memory_space<vmem>>, vector<16x32xf32>
    %1 = arith.mulf %0, %0 : vector<16x32xf32>
    %cst = arith.constant dense<0.000000e+00> : vector<16xf32>
    %2 = vector.multi_reduction <add>, %1, %cst [1] : vector<16x32xf32> to vector<16xf32>
    %3 = vector.shape_cast %2 : vector<16xf32> to vector<16x1xf32>
    %cst_1 = arith.constant 3.125000e-02 : f32
    %4 = vector.broadcast %cst_1 : f32 to vector<16x1xf32>
    %5 = arith.mulf %3, %4 : vector<16x1xf32>
    %cst_2 = arith.constant 9.99999974E-6 : f32
    %6 = vector.broadcast %cst_2 : f32 to vector<16x1xf32>
    %7 = arith.addf %5, %6 : vector<16x1xf32>
    %8 = math.rsqrt %7 : vector<16x1xf32>
    %9 = vector.broadcast %8 : vector<16x1xf32> to vector<16x32xf32>
    %10 = arith.mulf %0, %9 : vector<16x32xf32>
    %c0_3 = arith.constant 0 : index
    %c0_4 = arith.constant 0 : index
    %11 = vector.load %arg3[%c0_3, %c0_4] : memref<1x32xf32, #tpu.memory_space<vmem>>, vector<1x32xf32>
    %12 = vector.broadcast %11 : vector<1x32xf32> to vector<16x32xf32>
    %13 = arith.mulf %10, %12 : vector<16x32xf32>
    %c0_5 = arith.constant 0 : index
    %c0_6 = arith.constant 0 : index
    %14 = vector.load %arg4[%c0_5, %c0_6] : memref<32x128xf32, #tpu.memory_space<vmem>>, vector<32x128xf32>
    %cst_7 = arith.constant dense<0.000000e+00> : vector<16x128xf32>
    %15 = tpu.matmul %13, %14, %cst_7 {dimension_numbers = #tpu.dot_dimension_numbers<[1], [0], [0], [1], [0, 0, 1, 1], [], []>} : vector<16x32xf32>, vector<32x128xf32>, vector<16x128xf32> -> vector<16x128xf32>
    %c0_8 = arith.constant 0 : index
    %c0_9 = arith.constant 0 : index
    %16 = vector.load %arg5[%c0_8, %c0_9] : memref<16x128xf32, #tpu.memory_space<vmem>>, vector<16x128xf32>
    tpu.vector_store %arg5[%c0_8, %c0_9], %15 {strides = array<i32>} : memref<16x128xf32, #tpu.memory_space<vmem>>, vector<16x128xf32>,
    return
  }
  func.func @transform_0(%arg0: i32, %arg1: i32) -> (i32, i32) {
    %c0_i32 = arith.constant 0 : i32
    %c0_i32_0 = arith.constant 0 : i32
    return %arg0, %c0_i32 : i32, i32
  }
  func.func @transform_1(%arg0: i32, %arg1: i32) -> (i32, i32) {
    %c0_i32 = arith.constant 0 : i32
    %c0_i32_0 = arith.constant 0 : i32
    %c0_i32_1 = arith.constant 0 : i32
    return %c0_i32, %c0_i32_0 : i32, i32
  }
  func.func @transform_2(%arg0: i32, %arg1: i32) -> (i32, i32) {
    %c0_i32 = arith.constant 0 : i32
    %c0_i32_0 = arith.constant 0 : i32
    return %c0_i32, %arg1 : i32, i32
  }
  func.func @transform_3(%arg0: i32, %arg1: i32) -> (i32, i32) {
    %c0_i32 = arith.constant 0 : i32
    return %arg0, %arg1 : i32, i32
  }
}

module attributes {stable_mosaic.version = 11 : i64} {
  func.func @_swiglu_matmul_kernel(%arg0: i32, %arg1: i32, %arg2: memref<16x2x64xf32, #tpu.memory_space<vmem>>, %arg3: memref<64x32xf32, #tpu.memory_space<vmem>>, %arg4: memref<16x32xf32, #tpu.memory_space<vmem>>, %arg5: memref<16x32xf32, #tpu.memory_space<vmem>>) attributes {dimension_semantics = [#tpu.dimension_semantics<parallel>, #tpu.dimension_semantics<parallel>], iteration_bounds = array<i64: 1, 1>, scalar_prefetch = 0 : i64, scratch_operands = 0 : i64, tpu.core_type = #tpu.core_type<tc>, window_params = [{transform_indices = @transform_0, window_bounds = array<i64: 16, 2, 64>}, {transform_indices = @transform_1, window_bounds = array<i64: 64, 32>}, {transform_indices = @transform_2, window_bounds = array<i64: 16, 32>}, {transform_indices = @transform_3, window_bounds = array<i64: 16, 32>}]} {
    %c0 = arith.constant 0 : index
    %c0_0 = arith.constant 0 : index
    %c0_1 = arith.constant 0 : index
    %0 = vector.load %arg2[%c0, %c0_0, %c0_1] : memref<16x2x64xf32, #tpu.memory_space<vmem>>, vector<16x1x64xf32>
    %1 = vector.shape_cast %0 : vector<16x1x64xf32> to vector<16x64xf32>
    %c0_2 = arith.constant 0 : index
    %c1 = arith.constant 1 : index
    %c0_3 = arith.constant 0 : index
    %2 = vector.load %arg2[%c0_2, %c1, %c0_3] : memref<16x2x64xf32, #tpu.memory_space<vmem>>, vector<16x1x64xf32>
    %3 = vector.shape_cast %2 : vector<16x1x64xf32> to vector<16x64xf32>
    %4 = arith.negf %1 : vector<16x64xf32>
    %5 = math.exp %4 : vector<16x64xf32>
    %cst = arith.constant 1.000000e+00 : f32
    %6 = vector.broadcast %cst : f32 to vector<16x64xf32>
    %7 = arith.addf %6, %5 : vector<16x64xf32>
    %8 = arith.divf %6, %7 : vector<16x64xf32>
    %9 = arith.mulf %1, %8 : vector<16x64xf32>
    %10 = arith.mulf %9, %3 : vector<16x64xf32>
    %c0_4 = arith.constant 0 : index
    %c0_5 = arith.constant 0 : index
    %11 = vector.load %arg3[%c0_4, %c0_5] : memref<64x32xf32, #tpu.memory_space<vmem>>, vector<64x32xf32>
    %cst_6 = arith.constant dense<0.000000e+00> : vector<16x32xf32>
    %12 = tpu.matmul %10, %11, %cst_6 {dimension_numbers = #tpu.dot_dimension_numbers<[1], [0], [0], [1], [0, 0, 1, 1], [], []>} : vector<16x64xf32>, vector<64x32xf32>, vector<16x32xf32> -> vector<16x32xf32>
    %c0_7 = arith.constant 0 : index
    %c0_8 = arith.constant 0 : index
    %13 = vector.load %arg4[%c0_7, %c0_8] : memref<16x32xf32, #tpu.memory_space<vmem>>, vector<16x32xf32>
    %14 = arith.addf %12, %13 : vector<16x32xf32>
    %c0_9 = arith.constant 0 : index
    %c0_10 = arith.constant 0 : index
    %15 = vector.load %arg5[%c0_9, %c0_10] : memref<16x32xf32, #tpu.memory_space<vmem>>, vector<16x32xf32>
    tpu.vector_store %arg5[%c0_9, %c0_10], %14 {strides = array<i32>} : memref<16x32xf32, #tpu.memory_space<vmem>>, vector<16x32xf32>,
    return
  }
  func.func @transform_0(%arg0: i32, %arg1: i32) -> (i32, i32, i32) {
    %c0_i32 = arith.constant 0 : i32
    %c0_i32_0 = arith.constant 0 : i32
    %c0_i32_1 = arith.constant 0 : i32
    return %arg0, %c0_i32, %c0_i32_0 : i32, i32, i32
  }
  func.func @transform_1(%arg0: i32, %arg1: i32) -> (i32, i32) {
    %c0_i32 = arith.constant 0 : i32
    %c0_i32_0 = arith.constant 0 : i32
    return %c0_i32, %arg1 : i32, i32
  }
  func.func @transform_2(%arg0: i32, %arg1: i32) -> (i32, i32) {
    %c0_i32 = arith.constant 0 : i32
    return %arg0, %arg1 : i32, i32
  }
  func.func @transform_3(%arg0: i32, %arg1: i32) -> (i32, i32) {
    %c0_i32 = arith.constant 0 : i32
    return %arg0, %arg1 : i32, i32
  }
}

module attributes {stable_mosaic.version = 11 : i64} {
  func.func @_rmsnorm_matmul_kernel(%arg0: i32, %arg1: i32, %arg2: memref<16x32xf32, #tpu.memory_space<vmem>>, %arg3: memref<1x32xf32, #tpu.memory_space<vmem>>, %arg4: memref<32x64xf32, #tpu.memory_space<vmem>>, %arg5: memref<16x64xf32, #tpu.memory_space<vmem>>) attributes {dimension_semantics = [#tpu.dimension_semantics<parallel>, #tpu.dimension_semantics<parallel>], iteration_bounds = array<i64: 1, 1>, scalar_prefetch = 0 : i64, scratch_operands = 0 : i64, tpu.core_type = #tpu.core_type<tc>, window_params = [{transform_indices = @transform_0, window_bounds = array<i64: 16, 32>}, {pipeline_mode = #tpu.pipeline_mode<synchronous>, transform_indices = @transform_1, window_bounds = array<i64: 1, 32>}, {transform_indices = @transform_2, window_bounds = array<i64: 32, 64>}, {transform_indices = @transform_3, window_bounds = array<i64: 16, 64>}]} {
    %c0 = arith.constant 0 : index
    %c0_0 = arith.constant 0 : index
    %0 = vector.load %arg2[%c0, %c0_0] : memref<16x32xf32, #tpu.memory_space<vmem>>, vector<16x32xf32>
    %1 = arith.mulf %0, %0 : vector<16x32xf32>
    %cst = arith.constant dense<0.000000e+00> : vector<16xf32>
    %2 = vector.multi_reduction <add>, %1, %cst [1] : vector<16x32xf32> to vector<16xf32>
    %3 = vector.shape_cast %2 : vector<16xf32> to vector<16x1xf32>
    %cst_1 = arith.constant 3.125000e-02 : f32
    %4 = vector.broadcast %cst_1 : f32 to vector<16x1xf32>
    %5 = arith.mulf %3, %4 : vector<16x1xf32>
    %cst_2 = arith.constant 9.99999974E-6 : f32
    %6 = vector.broadcast %cst_2 : f32 to vector<16x1xf32>
    %7 = arith.addf %5, %6 : vector<16x1xf32>
    %8 = math.rsqrt %7 : vector<16x1xf32>
    %9 = vector.broadcast %8 : vector<16x1xf32> to vector<16x32xf32>
    %10 = arith.mulf %0, %9 : vector<16x32xf32>
    %c0_3 = arith.constant 0 : index
    %c0_4 = arith.constant 0 : index
    %11 = vector.load %arg3[%c0_3, %c0_4] : memref<1x32xf32, #tpu.memory_space<vmem>>, vector<1x32xf32>
    %12 = vector.broadcast %11 : vector<1x32xf32> to vector<16x32xf32>
    %13 = arith.mulf %10, %12 : vector<16x32xf32>
    %c0_5 = arith.constant 0 : index
    %c0_6 = arith.constant 0 : index
    %14 = vector.load %arg4[%c0_5, %c0_6] : memref<32x64xf32, #tpu.memory_space<vmem>>, vector<32x64xf32>
    %cst_7 = arith.constant dense<0.000000e+00> : vector<16x64xf32>
    %15 = tpu.matmul %13, %14, %cst_7 {dimension_numbers = #tpu.dot_dimension_numbers<[1], [0], [0], [1], [0, 0, 1, 1], [], []>} : vector<16x32xf32>, vector<32x64xf32>, vector<16x64xf32> -> vector<16x64xf32>
    %c0_8 = arith.constant 0 : index
    %c0_9 = arith.constant 0 : index
    %16 = vector.load %arg5[%c0_8, %c0_9] : memref<16x64xf32, #tpu.memory_space<vmem>>, vector<16x64xf32>
    tpu.vector_store %arg5[%c0_8, %c0_9], %15 {strides = array<i32>} : memref<16x64xf32, #tpu.memory_space<vmem>>, vector<16x64xf32>,
    return
  }
  func.func @transform_0(%arg0: i32, %arg1: i32) -> (i32, i32) {
    %c0_i32 = arith.constant 0 : i32
    %c0_i32_0 = arith.constant 0 : i32
    return %arg0, %c0_i32 : i32, i32
  }
  func.func @transform_1(%arg0: i32, %arg1: i32) -> (i32, i32) {
    %c0_i32 = arith.constant 0 : i32
    %c0_i32_0 = arith.constant 0 : i32
    %c0_i32_1 = arith.constant 0 : i32
    return %c0_i32, %c0_i32_0 : i32, i32
  }
  func.func @transform_2(%arg0: i32, %arg1: i32) -> (i32, i32) {
    %c0_i32 = arith.constant 0 : i32
    %c0_i32_0 = arith.constant 0 : i32
    return %c0_i32, %arg1 : i32, i32
  }
  func.func @transform_3(%arg0: i32, %arg1: i32) -> (i32, i32) {
    %c0_i32 = arith.constant 0 : i32
    return %arg0, %arg1 : i32, i32
  }
}

</mosaic_0001>

<bundles_post_ra>
// kernel: transformer_forward.13
= control target key start
LH: loop header
LB: loop body
LE: loop exit
PB: predicated region body
PF: predicated region fallthrough
CT: control target
= control target key end

     0   :  { %vm22_vm0 = vcmask 261120   ;;  %s191_s1 = inlined_call_operand.vmem [shape: f32[32,32], index: 1, kind: input, shape index: {}]   ;;  %s192_s0 = inlined_call_operand.vmem [shape: f32[16,32], index: 0, kind: input, shape index: {}]   ;;  %s193_s2 = inlined_call_operand.vmem [shape: f32[16,32], index: 2, kind: input, shape index: {}]   ;;  %s194_s3 = inlined_call_operand.vmem [shape: f32[16,32], index: 3, kind: output, shape index: {}]  }
   0x1   :  { %v16_v0 = vld [vmem:[%s191_s1] sm:$0xff]  ;;  %v17_v1 = vld [vmem:[%s191_s1 + $0x8] sm:$0xff]  ;;  %v18_v2 = vld [vmem:[%s191_s1 + $0x10] sm:$0xff] }
   0x2   :  { %v129_v3 = vpack.c.bf16 %v17_v1, %v16_v0  ;;  %v19_v4 = vld [vmem:[%s191_s1 + $0x18] sm:$0xff]  ;;  %v14_v5 = vld [vmem:[%s192_s0] sm:$0xff]  ;;  %v15_v7 = vld [vmem:[%s192_s0 + $0x8] sm:$0xff] }
   0x3   :  { %v133_v6 = vpack.c.bf16 %v19_v4, %v18_v2  ;;  %126 = vmatprep.mubr.msk.f32.mxu0 %vm22_vm0, %v14_v5  ;;  %v21_v8 = vld [vmem:[%s193_s2 + $0x8] sm:$0xff]  ;;  %v20_v9 = vld [vmem:[%s193_s2] sm:$0xff] }
   0x4   :  { %130 = vmatprep.subr.bf16.mxu0 %v129_v3 }
   0x5   :  { %132 = vmatpush3.bf16.msra.mxu0 %v129_v3 }
   0x6   :  { %134 = vmatprep.subr.bf16.mxu0 %v133_v6 }
   0x9   :  { %136 = vmatpush3.bf16.msra.mxu0 %v133_v6 }
   0xc   :  { %127 = vmatmul.mubr.msk.f32.vlgmr.msra.gmra.mrb[0].mxu0 %vm22_vm0, %v15_v7 }
  0xdf   :  { %v128_v10 = vpop.f32.mrb[0].mxu0 }
  0xe0   :  { %v101_v11 = vadd.f32 %v128_v10, %v21_v8  ;;  %v95_v12 = vpop.f32.mrb[1].mxu0 }
  0xe1   :  { %v96_v13 = vadd.f32 %v95_v12, %v20_v9 }
  0xe2   :  { %105 = vst.msk [vmem:[%s194_s3 + $0x8] sm:$0xff] %vm22_vm0, %v101_v11 }
  0xe3   :  { %104 = vst.msk [vmem:[%s194_s3] sm:$0xff] %vm22_vm0, %v96_v13 }

// kernel: transformer_forward.11
= control target key start
LH: loop header
LB: loop body
LE: loop exit
PB: predicated region body
PF: predicated region fallthrough
CT: control target
= control target key end

     0   :  { %vm18_vm0 = vcmask 261120   ;;  %vm127_vm1 = vcmask 785408   ;;  %s217_s0 = inlined_call_operand.vmem [shape: f32[16,32], index: 0, kind: input, shape index: {}]   ;;  %s218_s2 = inlined_call_operand.vmem [shape: f32[32,96], index: 2, kind: input, shape index: {}]   ;;  %s219_s1 = inlined_call_operand.vmem [shape: f32[1,32], index: 1, kind: input, shape index: {}]   ;;  %s220_s3 = inlined_call_operand.vmem [shape: f32[16,96], index: 3, kind: output, shape index: {}]  }
   0x1   :  { %v14_v0 = vld [vmem:[%s217_s0] sm:$0xff]  ;;  %v15_v1 = vld [vmem:[%s217_s0 + $0x8] sm:$0xff]  ;;  %v44_v8 = vld [vmem:[%s218_s2 + $0x10] sm:$0xff] }
   0x2   :  { %v16_v2 = vmul.f32 %v14_v0, %v14_v0  ;;  %v17_v3 = vmul.f32 %v15_v1, %v15_v1  ;;  %v42_v6 = vld [vmem:[%s218_s2] sm:$0xff]  ;;  %v43_v7 = vld [vmem:[%s218_s2 + $0x8] sm:$0xff]  ;;  %v45_v10 = vld [vmem:[%s218_s2 + $0x18] sm:$0xff] }
   0x3   :  { %v154_v9 = vpack.c.bf16 %v43_v7, %v42_v6  ;;  %v158_v11 = vpack.c.bf16 %v45_v10, %v44_v8  ;;  %v134_v19 = vld [vmem:[%s219_s1] ss:$0 sm:$0xff] }
   0x4   :  { %v19_v4 = vsel %vm18_vm0, %v16_v2, 0.0  ;;  %v22_v5 = vsel %vm18_vm0, %v17_v3, 0.0 }
   0x5   :  { %20 = vadd.xlane.f32.xlu0 %v19_v4  ;;  %155 = vmatprep.subr.bf16.mxu0 %v154_v9 }
   0x6   :  { %157 = vmatpush3.bf16.msra.mxu0 %v154_v9 }
   0x7   :  { %159 = vmatprep.subr.bf16.mxu0 %v158_v11 }
   0x9   :  { %23 = vadd.xlane.f32.xlu0 %v22_v5 }
   0xa   :  { %161 = vmatpush3.bf16.msra.mxu0 %v158_v11 }
  0x92   :  { %v21_v12 = vpop.xlane.xlu0 %20 }
  0x93   :  { %v25_v13 = vmul.f32 0.03125, %v21_v12 }
  0x95   :  { %v27_v14 = vadd.f32 1e-05, %v25_v13 }
  0x96   :  { %v24_v15 = vpop.xlane.xlu0 %23 }
  0x97   :  { %162 = vrsqrt.f32 %v27_v14  ;;  %v26_v16 = vmul.f32 0.03125, %v24_v15 }
  0x99   :  { %v28_v17 = vadd.f32 1e-05, %v26_v16 }
  0x9b   :  { %164 = vrsqrt.f32 %v28_v17 }
  0xa1   :  { %v163_v18 = vpop.eup %162 }
  0xa2   :  { %v31_v20 = vmul.f32 %v163_v18, %v14_v0 }
  0xa4   :  { %v40_v21 = vmul.f32 %v134_v19, %v31_v20 }
  0xa5   :  { %v165_v22 = vpop.eup %164 }
  0xa6   :  { %v32_v23 = vmul.f32 %v165_v22, %v15_v1  ;;  %151 = vmatprep.mubr.msk.f32.mxu0 %vm18_vm0, %v40_v21 }
  0xa8   :  { %v41_v24 = vmul.f32 %v134_v19, %v32_v23 }
  0xaa   :  { %152 = vmatmul.mubr.msk.f32.vlgmr.msra.gmra.mrb[0].mxu0 %vm18_vm0, %v41_v24 }
 0x17d   :  { %v153_v25 = vpop.f32.mrb[0].mxu0 }
 0x17e   :  { %129 = vst.msk [vmem:[%s220_s3 + $0x8] sm:$0xff] %vm127_vm1, %v153_v25  ;;  %v118_v26 = vpop.f32.mrb[1].mxu0 }
 0x17f   :  { %128 = vst.msk [vmem:[%s220_s3] sm:$0xff] %vm127_vm1, %v118_v26 }

// kernel: transformer_forward.12
= control target key start
LH: loop header
LB: loop body
LE: loop exit
PB: predicated region body
PF: predicated region fallthrough
CT: control target
= control target key end

     0   :  { %s857_s21 = smov 0   ;;  %s859_s22 = smov 0   ;;  %s941_s0 = inlined_call_operand.vmem [shape: f32[2,2,8,16], index: 0, kind: input, shape index: {}]   ;;  %s942_s1 = inlined_call_operand.vmem [shape: f32[2,2,8,16], index: 1, kind: input, shape index: {}]   ;;  %s943_s2 = inlined_call_operand.vmem [shape: f32[2,2,8,16], index: 2, kind: input, shape index: {}]   ;;  %s944_s3 = inlined_call_operand.vmem [shape: f32[8,16], index: 3, kind: input, shape index: {}]   ;;  %s945_s4 = inlined_call_operand.vmem [shape: f32[8,16], index: 4, kind: input, shape index: {}]   ;;  %s946_s5 = inlined_call_operand.vmem [shape: f32[2,1,8], index: 5, kind: input, shape index: {}]   ;;  %s947_s6 = inlined_call_operand.vmem [shape: f32[2,2,8,16], index: 6, kind: output, shape index: {}]  }
   0x1   :  { %s861_s23 = smov 0   ;;  %s863_s24 = smov 0  }
   0x2   :  { %s865_s25 = smov 0  }
   0x3 LB: > { %s25_s26 = sadd.s32 1, %s807_s23  ;;  %s28_s27 = sadd.s32 1, %s811_s24  ;;  %s815_s25 = sphi %s865_s25, %s16_s25   ;;  %s811_s24 = sphi %s863_s24, %s951_s24   ;;  %s807_s23 = sphi %s861_s23, %s950_s23   ;;  %s803_s22 = sphi %s859_s22, %s949_s22   ;;  %s799_s21 = sphi %s857_s21, %s948_s21  }
   0x4   : > { %p26_p0 = scmp.ge.s32.totalorder %s25_s26, 2  ;;  %p700_p1 = scmp.ge.s32.totalorder %s815_s25, 1 }
   0x5   : > { %p269_p2 = scmp.lt.s32.totalorder %s815_s25, 5 }
   0x6   : > { %s953_s26 = smov (%p26_p0, %s25_s26), 0  ;;  %s955_s27 = smov (!%p26_p0, %s28_s27), %s811_s24 }
   0x7   : > { %p270_p3 = pnand %p700_p1, %p269_p2  ;;  %p30_p4 = scmp.ge.s32.totalorder %s955_s27, 2 }
   0x8   : > { %p324_p5 = scmp.lt.s32.totalorder (!%p270_p3), %s803_s22, 1  ;;  %p326_p6 = scmp.lt.s32.totalorder (!%p270_p3), %s799_s21, 1  ;;  %v817_v0 = vmov (!%p270_p3), 0.0   ;;  %vm818_vm0 = vmmov (!%p270_p3), 0   ;;  %v362_v5 = vld [vmem:[%s944_s3] sm:$0xff] (!%p270_p3)  ;;  %vm371_vm1 = vcmask (!%p270_p3), 64512   ;;  %v465_v17 = vlaneseq (!%p270_p3) }
   0x9   : > { %s957_s27 = smov (%p30_p4, %s955_s27), 0  ;;  %273 = sbr.rel (%p270_p3) target bundleno = 891 (0x37b), region = 44 }
   0xa   : > { %718 = vmatprep.subr.mxu0 (!%p270_p3), %v817_v0  ;;  %723 = vmatprep.subr.mxu1 (!%p270_p3), %v817_v0  ;;  %s819_s13 = smov (!%p270_p3), 120   ;;  %s820_s14 = smov (!%p270_p3), 8   ;;  %v363_v6 = vld [vmem:[%s945_s4] sm:$0xff] (!%p270_p3)  ;;  %vm387_vm2 = vcmask (!%p270_p3), 130048   ;;  %v466_v19 = vshrl.u32 (!%p270_p3), %v465_v17, 7  ;;  %v821_v21 = vmov (!%p270_p3), 0  }
   0xb   : > { %720 = vmatprep.mubr.msk.f32.mxu0 (!%p270_p3), %vm818_vm0, %v817_v0  ;;  %725 = vmatprep.mubr.msk.f32.mxu1 (!%p270_p3), %vm818_vm0, %v817_v0  ;;  %v468_v23 = vand.u32 (!%p270_p3), 127, %v465_v17 }
   0xc   : > { %v475_v20 = vsub.s32 (!%p270_p3), 0, %v466_v19 }
   0xd   : > { %vm469_vm4 = vcmp.ge.s32.totalorder (!%p270_p3), %v466_v19, %v468_v23 }
  0x10   : > { %s959_s22 = smov (!%p324_p5, %s803_s22), 1  ;;  %s961_s21 = smov (!%p326_p6, %s799_s21), 1 }
  0x11   : > { %s701_s28 = sshll.u32 %s959_s22, 1 }
  0x12   : > { %s329_s29 = sadd.s32 %s701_s28, %s961_s21  ;;  %s350_s21 = scalar_lea.vmem %s946_s5, %s959_s22 }
  0x13   : > { %s890_s30 = sshll.u32 %s329_s29, 3  ;;  %v470_v18 = vld [vmem:[%s350_s21] sm:$0x1] }
  0x14   : > { %s339_s9 = scalar_lea.vmem %s942_s1, %s890_s30  ;;  %s331_s12 = scalar_lea.vmem %s941_s0, %s890_s30  ;;  %vm471_vm3 = vcmp.gt.f32.partialorder %v470_v18, 0.5 }
  0x15   : > { %v360_v1 = vld [vmem:[%s339_s9] sm:$0xff]  ;;  %v472_v22 = vsel %vm471_vm3, 1, %v821_v21  ;;  %s347_s29 = scalar_lea.vmem %s943_s2, %s890_s30  ;;  %s358_s9 = scalar_lea.vmem %s947_s6, %s890_s30 }
  0x16   : > { %v359_v2 = vld [vmem:[%s331_s12] sm:$0xff]  ;;  %377 = vrot.lane.b32.xlu0 %v360_v1, %s819_s13  ;;  %v384_v7 = vmul.f32 %v362_v5, %v360_v1  ;;  %v476_v24 = vrot.slane %v472_v22, %v475_v20 }
  0x17   : > { %365 = vrot.lane.b32.xlu1 %v359_v2, %s819_s13  ;;  %v373_v13 = vmul.f32 %v362_v5, %v359_v2  ;;  %v361_v35 = vld [vmem:[%s347_s29] sm:$0xff] }
  0x18   : > { %vm477_vm5 = vcmp.eq.s32.totalorder %v476_v24, 1  ;;  %724 = vmatpush3.msra.mxu1 %v361_v35 }
  0x19   : > { %vm478_vm6 = vmand %vm469_vm4, %vm477_vm5 }
  0x1a   : > { %380 = vrot.lane.b32.xlu0 %v360_v1, %s820_s14 }
  0x1b   : > { %368 = vrot.lane.b32.xlu1 %v359_v2, %s820_s14 }
  0x88   : > { %v378_v3 = vpop.permute.xlu0 %377 }
  0x89   : > { %v366_v4 = vpop.permute.xlu1 %365 }
  0x8c   : > { %v381_v8 = vpop.permute.xlu0 %380 }
  0x8d   : > { %v369_v9 = vpop.permute.xlu1 %368  ;;  %v383_v10 = vsel %vm371_vm1, %v378_v3, %v381_v8 }
  0x8e   : > { %v372_v11 = vsel %vm371_vm1, %v366_v4, %v369_v9  ;;  %v385_v12 = vmul.f32 %v383_v10, %v363_v6 }
  0x8f   : > { %v374_v14 = vmul.f32 %v372_v11, %v363_v6 }
  0x90   : > { %v386_v15 = vadd.f32 %v385_v12, %v384_v7 }
  0x91   : > { %v375_v16 = vadd.f32 %v374_v14, %v373_v13 }
  0x92   : > { %719 = vmatpush3.xpose.msk.msra.mxu0 %vm387_vm2, %v386_v15 }
  0x95   : > { %721 = vmatmul.mubr.msk.f32.vlgmr.msra.gmra.mrb[0].mxu0 %vm387_vm2, %v375_v16 }
 0x168   : > { %v460_v25 = vpop.f32.mrb[0].mxu0 }
 0x169   : > { %v464_v26 = vmul.f32 0.25, %v460_v25  ;;  %v722_v27 = vpop.f32.mrb[1].mxu0 }
 0x16b   : > { %v479_v28 = vsel %vm478_vm6, %v464_v26, -inf }
 0x16c   : > { %v480_v29 = vsel %vm371_vm1, %v479_v28, -inf }
 0x16d   : > { %481 = vmax.xlane.f32.xlu0 %v480_v29 }
 0x1fa   : > { %v482_v30 = vpop.xlane.xlu0 %481 }
 0x1fb   : > { %v483_v31 = vsub.f32 %v479_v28, %v482_v30 }
 0x1fd   : > { %v484_v32 = vmul.f32 1.442695, %v483_v31 }
 0x1ff   : > { %773 = vpow2.f32 %v484_v32 }
 0x209   : > { %v774_v33 = vpop.eup %773 }
 0x20a   : > { %v486_v34 = vsel %vm371_vm1, %v774_v33, 0.0 }
 0x20b   : > { %487 = vadd.xlane.f32.xlu1 %v486_v34 }
 0x298   : > { %v488_v36 = vpop.xlane.xlu1 %487 }
 0x299   : > { %775 = vrcp.f32 %v488_v36 }
 0x2a3   : > { %v776_v37 = vpop.eup %775 }
 0x2a4   : > { %v490_v38 = vmul.f32 %v776_v37, %v774_v33 }
 0x2a6   : > { %726 = vmatmul.mubr.msk.f32.vlgmr.msra.gmra.mrb[0].mxu1 %vm371_vm1, %v490_v38 }
 0x379   : > { %v560_v39 = vpop.f32.mrb[0].mxu1 }
 0x37a   : > { %564 = vst.msk [vmem:[%s358_s9] sm:$0xff] %vm387_vm2, %v560_v39  ;;  %v727_v40 = vpop.f32.mrb[1].mxu1 }
 0x37b PF: > { %s16_s25 = sadd.s32 1, %s815_s25   ;;  %s948_s21 = smov %s807_s23 }
 0x37c   : > { %p13_p7 = scmp.ge.s32.totalorder %s16_s25, 6   ;;  %s949_s22 = smov %s811_s24 }
 0x37d   : > { %s950_s23 = smov %s953_s26  ;;  %s951_s24 = smov %s957_s27 }
 0x37e   :  { %15 = sbr.rel (!%p13_p7) target bundleno = 3 (0x3), region = 83 }

// kernel: transformer_forward.14
= control target key start
LH: loop header
LB: loop body
LE: loop exit
PB: predicated region body
PF: predicated region fallthrough
CT: control target
= control target key end

     0   :  { %vm18_vm0 = vcmask 261120   ;;  %s216_s0 = inlined_call_operand.vmem [shape: f32[16,32], index: 0, kind: input, shape index: {}]   ;;  %s217_s2 = inlined_call_operand.vmem [shape: f32[32,128], index: 2, kind: input, shape index: {}]   ;;  %s218_s1 = inlined_call_operand.vmem [shape: f32[1,32], index: 1, kind: input, shape index: {}]   ;;  %s219_s3 = inlined_call_operand.vmem [shape: f32[16,128], index: 3, kind: output, shape index: {}]  }
   0x1   :  { %v14_v0 = vld [vmem:[%s216_s0] sm:$0xff]  ;;  %v15_v1 = vld [vmem:[%s216_s0 + $0x8] sm:$0xff]  ;;  %v44_v8 = vld [vmem:[%s217_s2 + $0x10] sm:$0xff] }
   0x2   :  { %v16_v2 = vmul.f32 %v14_v0, %v14_v0  ;;  %v17_v3 = vmul.f32 %v15_v1, %v15_v1  ;;  %v42_v6 = vld [vmem:[%s217_s2] sm:$0xff]  ;;  %v43_v7 = vld [vmem:[%s217_s2 + $0x8] sm:$0xff]  ;;  %v45_v10 = vld [vmem:[%s217_s2 + $0x18] sm:$0xff] }
   0x3   :  { %v153_v9 = vpack.c.bf16 %v43_v7, %v42_v6  ;;  %v157_v11 = vpack.c.bf16 %v45_v10, %v44_v8  ;;  %v133_v19 = vld [vmem:[%s218_s1] ss:$0 sm:$0xff] }
   0x4   :  { %v19_v4 = vsel %vm18_vm0, %v16_v2, 0.0  ;;  %v22_v5 = vsel %vm18_vm0, %v17_v3, 0.0 }
   0x5   :  { %20 = vadd.xlane.f32.xlu0 %v19_v4  ;;  %154 = vmatprep.subr.bf16.mxu0 %v153_v9 }
   0x6   :  { %156 = vmatpush3.bf16.msra.mxu0 %v153_v9 }
   0x7   :  { %158 = vmatprep.subr.bf16.mxu0 %v157_v11 }
   0x9   :  { %23 = vadd.xlane.f32.xlu0 %v22_v5 }
   0xa   :  { %160 = vmatpush3.bf16.msra.mxu0 %v157_v11 }
  0x92   :  { %v21_v12 = vpop.xlane.xlu0 %20 }
  0x93   :  { %v25_v13 = vmul.f32 0.03125, %v21_v12 }
  0x95   :  { %v27_v14 = vadd.f32 1e-05, %v25_v13 }
  0x96   :  { %v24_v15 = vpop.xlane.xlu0 %23 }
  0x97   :  { %161 = vrsqrt.f32 %v27_v14  ;;  %v26_v16 = vmul.f32 0.03125, %v24_v15 }
  0x99   :  { %v28_v17 = vadd.f32 1e-05, %v26_v16 }
  0x9b   :  { %163 = vrsqrt.f32 %v28_v17 }
  0xa1   :  { %v162_v18 = vpop.eup %161 }
  0xa2   :  { %v31_v20 = vmul.f32 %v162_v18, %v14_v0 }
  0xa4   :  { %v40_v21 = vmul.f32 %v133_v19, %v31_v20 }
  0xa5   :  { %v164_v22 = vpop.eup %163 }
  0xa6   :  { %v32_v23 = vmul.f32 %v164_v22, %v15_v1  ;;  %150 = vmatprep.mubr.msk.f32.mxu0 %vm18_vm0, %v40_v21 }
  0xa8   :  { %v41_v24 = vmul.f32 %v133_v19, %v32_v23 }
  0xaa   :  { %151 = vmatmul.mubr.msk.f32.vlgmr.msra.gmra.mrb[0].mxu0 %vm18_vm0, %v41_v24 }
 0x17d   :  { %v152_v25 = vpop.f32.mrb[0].mxu0 }
 0x17e   :  { %128 = vst [vmem:[%s219_s3 + $0x8] sm:$0xff] %v152_v25  ;;  %v118_v26 = vpop.f32.mrb[1].mxu0 }
 0x17f   :  { %127 = vst [vmem:[%s219_s3] sm:$0xff] %v118_v26 }

// kernel: transformer_forward.21
= control target key start
LH: loop header
LB: loop body
LE: loop exit
PB: predicated region body
PF: predicated region fallthrough
CT: control target
= control target key end

     0   :  { %vm19_vm0 = vcmask 261120   ;;  %s266_s0 = inlined_call_operand.vmem [shape: f32[16,32], index: 0, kind: input, shape index: {}]   ;;  %s267_s1 = inlined_call_operand.vmem [shape: f32[1,32], index: 1, kind: input, shape index: {}]   ;;  %s268_s2 = inlined_call_operand.vmem [shape: f32[32,64], index: 2, kind: input, shape index: {}]   ;;  %s269_s3 = inlined_call_operand.hbm [shape: f32[16,64], index: 3, kind: output, shape index: {}]  }
   0x1   :  { %v15_v0 = vld [vmem:[%s266_s0] sm:$0xff]  ;;  %v16_v1 = vld [vmem:[%s266_s0 + $0x8] sm:$0xff] }
   0x2   :  { %8 = vsyncpa [#allocation3], 0  ;;  %v17_v2 = vmul.f32 %v15_v0, %v15_v0  ;;  %v18_v3 = vmul.f32 %v16_v1, %v16_v1  ;;  %v43_v6 = vld [vmem:[%s268_s2] sm:$0xff]  ;;  %v44_v7 = vld [vmem:[%s268_s2 + $0x8] sm:$0xff]  ;;  %vm128_vm1 = vcmask 523264  }
   0x3   :  { %v45_v8 = vld [vmem:[%s268_s2 + $0x10] sm:$0xff]  ;;  %v167_v9 = vpack.c.bf16 %v44_v7, %v43_v6  ;;  %v46_v10 = vld [vmem:[%s268_s2 + $0x18] sm:$0xff]  ;;  %v147_v19 = vld [vmem:[%s267_s1] ss:$0 sm:$0xff]  ;;  %s206_s2 = smov [#allocation2]  }
   0x4   :  { %v20_v4 = vsel %vm19_vm0, %v17_v2, 0.0  ;;  %v23_v5 = vsel %vm19_vm0, %v18_v3, 0.0  ;;  %v171_v11 = vpack.c.bf16 %v46_v10, %v45_v8  ;;  %s136_s25 = sshll.u32 %s206_s2, 4  ;;  %s137_s25 = int_to_ptr.vmem [resolvable:$true] %s136_s25 }
   0x5   :  { %21 = vadd.xlane.f32.xlu0 %v20_v4  ;;  %168 = vmatprep.subr.bf16.mxu0 %v167_v9  ;;  %s182_s26 = scalar_lea.vmem %s137_s25, 256  ;;  %p187_p1 = scmp.lt.s32.totalorder %s137_s25, %s137_s25 }
   0x6   :  { %170 = vmatpush3.bf16.msra.mxu0 %v167_v9  ;;  %p183_p0 = scmp.ne.s32.totalorder %s137_s25, %s182_s26  ;;  %p188_p2 = scmp.lt.s32.totalorder %s182_s26, %s182_s26 }
   0x7   :  { %172 = vmatprep.subr.bf16.mxu0 %v171_v11 }
   0x8   :  { %p189_p3 = por %p188_p2, %p187_p1 }
   0x9   :  { %24 = vadd.xlane.f32.xlu0 %v23_v5 }
   0xa   :  { %174 = vmatpush3.bf16.msra.mxu0 %v171_v11  ;;  %p190_p4 = pnand %p189_p3, %p183_p0 }
  0x92   :  { %v22_v12 = vpop.xlane.xlu0 %21 }
  0x93   :  { %v26_v13 = vmul.f32 0.03125, %v22_v12 }
  0x95   :  { %v28_v14 = vadd.f32 1e-05, %v26_v13 }
  0x96   :  { %v25_v15 = vpop.xlane.xlu0 %24 }
  0x97   :  { %178 = vrsqrt.f32 %v28_v14  ;;  %v27_v16 = vmul.f32 0.03125, %v25_v15 }
  0x99   :  { %v29_v17 = vadd.f32 1e-05, %v27_v16 }
  0x9b   :  { %180 = vrsqrt.f32 %v29_v17 }
  0xa1   :  { %v179_v18 = vpop.eup %178 }
  0xa2   :  { %v32_v20 = vmul.f32 %v179_v18, %v15_v0 }
  0xa4   :  { %v41_v21 = vmul.f32 %v147_v19, %v32_v20 }
  0xa5   :  { %v181_v22 = vpop.eup %180 }
  0xa6   :  { %v33_v23 = vmul.f32 %v181_v22, %v16_v1  ;;  %164 = vmatprep.mubr.msk.f32.mxu0 %vm19_vm0, %v41_v21 }
  0xa8   :  { %v42_v24 = vmul.f32 %v147_v19, %v33_v23 }
  0xaa   :  { %165 = vmatmul.mubr.msk.f32.vlgmr.msra.gmra.mrb[0].mxu0 %vm19_vm0, %v42_v24 }
 0x17d   :  { %v166_v25 = vpop.f32.mrb[0].mxu0 }
 0x17e   :  { %130 = vst.msk [vmem:[#allocation2 + $0x8] sm:$0xff] %vm128_vm1, %v166_v25  ;;  %v119_v26 = vpop.f32.mrb[1].mxu0 }
 0x17f   :  { %129 = vst.msk [vmem:[#allocation2] sm:$0xff] %vm128_vm1, %v119_v26 }
 0x180   :  { %193 = shalt.err (!%p190_p4)
}
 0x181   :  { %s194_s28 = scalar_lea.hbm %s269_s3, 256 }
 0x182   :  { %p195_p5 = scmp.ne.s32.totalorder %s269_s3, %s194_s28  ;;  %p198_p6 = scmp.lt.u32.totalorder %s194_s28, %s269_s3 }
 0x184   :  { %p200_p7 = pnand %p198_p6, %p195_p5 }
 0x186   :  { %203 = shalt.err (!%p200_p7)
}
 0x187   :  { %s207_s6 = smov 128   ;;  %s208_s7 = smov 8  }
 0x188   :  { %142 = dma.vmem_to_hbm [thread:$0]  %s137_s25, 256, %s269_s3, [#allocation3], %s207_s6, %s207_s6, %s208_s7  }
 0x189   :  { %204 = dma.done.wait [#allocation3], 256  }
 0x18a   :  { %205 = vsyncadd [#allocation3], 4294967040 }
 0x18b   :  { %146 = vsyncpa [#allocation3], 1 }

// kernel: transformer_forward.15
= control target key start
LH: loop header
LB: loop body
LE: loop exit
PB: predicated region body
PF: predicated region fallthrough
CT: control target
= control target key end

     0   :  { %vm201_vm0 = vcmask 1041409   ;;  %vm204_vm1 = vcmask 1042434   ;;  %vm207_vm2 = vcmask 1043459   ;;  %vm210_vm3 = vcmask 1044484   ;;  %s681_s1 = inlined_call_operand.vmem [shape: f32[64,32], index: 1, kind: input, shape index: {}]   ;;  %s682_s0 = inlined_call_operand.vmem [shape: f32[16,2,64], index: 0, kind: input, shape index: {}]   ;;  %s683_s2 = inlined_call_operand.vmem [shape: f32[16,32], index: 2, kind: input, shape index: {}]   ;;  %s684_s3 = inlined_call_operand.vmem [shape: f32[16,32], index: 3, kind: output, shape index: {}]  }
   0x1   :  { %v174_v0 = vld [vmem:[%s681_s1] sm:$0xff]  ;;  %v175_v1 = vld [vmem:[%s681_s1 + $0x8] sm:$0xff]  ;;  %v176_v2 = vld [vmem:[%s681_s1 + $0x10] sm:$0xff]  ;;  %vm213_vm4 = vcmask 1045509   ;;  %vm216_vm5 = vcmask 1046534   ;;  %vm219_vm6 = vcmask 1047559  }
   0x2   :  { %v369_v3 = vpack.c.bf16 %v175_v1, %v174_v0  ;;  %v177_v4 = vld [vmem:[%s681_s1 + $0x18] sm:$0xff]  ;;  %v178_v6 = vld [vmem:[%s681_s1 + $0x20] sm:$0xff]  ;;  %v179_v7 = vld [vmem:[%s681_s1 + $0x28] sm:$0xff]  ;;  %vm235_vm7 = vcmask 523264   ;;  %vm315_vm8 = vcmask 261120  }
   0x3   :  { %v373_v5 = vpack.c.bf16 %v177_v4, %v176_v2  ;;  %v377_v8 = vpack.c.bf16 %v179_v7, %v178_v6  ;;  %v490_v9 = vld [vmem:[%s682_s0] sm:$0x1]  ;;  %v495_v10 = vld [vmem:[%s682_s0 + $0x2] sm:$0x1]  ;;  %v500_v11 = vld [vmem:[%s682_s0 + $0x4] sm:$0x1] }
   0x4   :  { %370 = vmatprep.subr.bf16.mxu0 %v369_v3  ;;  %v180_v12 = vld [vmem:[%s681_s1 + $0x30] sm:$0xff]  ;;  %v181_v13 = vld [vmem:[%s681_s1 + $0x38] sm:$0xff]  ;;  %v511_v14 = vld [vmem:[%s682_s0 + $0x6] sm:$0x1]  ;;  %v322_v17 = vmul.f32 -1.442695, %v490_v9 }
   0x5   :  { %372 = vmatpush3.bf16.msra.mxu0 %v369_v3  ;;  %v516_v15 = vld [vmem:[%s682_s0 + $0x8] sm:$0x1]  ;;  %v521_v16 = vld [vmem:[%s682_s0 + $0xa] sm:$0x1]  ;;  %v323_v18 = vmul.f32 -1.442695, %v495_v10  ;;  %v381_v20 = vpack.c.bf16 %v181_v13, %v180_v12 }
   0x6   :  { %374 = vmatprep.subr.bf16.mxu0 %v373_v5  ;;  %v324_v19 = vmul.f32 -1.442695, %v500_v11  ;;  %v529_v21 = vld [vmem:[%s682_s0 + $0xc] sm:$0x1]  ;;  %v534_v22 = vld [vmem:[%s682_s0 + $0xe] sm:$0x1]  ;;  %385 = vpow2.f32 %v322_v17 }
   0x7   :  { %v325_v23 = vmul.f32 -1.442695, %v511_v14  ;;  %v326_v24 = vmul.f32 -1.442695, %v516_v15  ;;  %387 = vpow2.f32 %v323_v18  ;;  %v327_v25 = vmul.f32 -1.442695, %v521_v16 }
   0x8   :  { %389 = vpow2.f32 %v324_v19  ;;  %v328_v26 = vmul.f32 -1.442695, %v529_v21  ;;  %v329_v27 = vmul.f32 -1.442695, %v534_v22  ;;  %v544_v28 = vld [vmem:[%s682_s0 + $0x10] sm:$0x1] }
   0x9   :  { %376 = vmatpush3.bf16.msra.mxu0 %v373_v5  ;;  %391 = vpow2.f32 %v325_v23  ;;  %v549_v29 = vld [vmem:[%s682_s0 + $0x12] sm:$0x1]  ;;  %v554_v30 = vld [vmem:[%s682_s0 + $0x14] sm:$0x1]  ;;  %v559_v31 = vld [vmem:[%s682_s0 + $0x16] sm:$0x1] }
   0xa   :  { %378 = vmatprep.subr.bf16.mxu0 %v377_v8  ;;  %393 = vpow2.f32 %v326_v24  ;;  %v564_v32 = vld [vmem:[%s682_s0 + $0x18] sm:$0x1]  ;;  %v330_v33 = vmul.f32 -1.442695, %v544_v28  ;;  %v331_v34 = vmul.f32 -1.442695, %v549_v29 }
   0xb   :  { %395 = vpow2.f32 %v327_v25  ;;  %v332_v35 = vmul.f32 -1.442695, %v554_v30  ;;  %v333_v36 = vmul.f32 -1.442695, %v559_v31  ;;  %v334_v37 = vmul.f32 -1.442695, %v564_v32 }
   0xc   :  { %397 = vpow2.f32 %v328_v26  ;;  %v574_v47 = vld [vmem:[%s682_s0 + $0x1a] sm:$0x1]  ;;  %v579_v50 = vld [vmem:[%s682_s0 + $0x1c] sm:$0x1]  ;;  %v584_v53 = vld [vmem:[%s682_s0 + $0x1e] sm:$0x1] }
   0xd   :  { %380 = vmatpush3.bf16.msra.mxu0 %v377_v8  ;;  %399 = vpow2.f32 %v329_v27  ;;  %v335_v56 = vmul.f32 -1.442695, %v574_v47  ;;  %v336_v59 = vmul.f32 -1.442695, %v579_v50  ;;  %v337_v61 = vmul.f32 -1.442695, %v584_v53 }
   0xe   :  { %382 = vmatprep.subr.bf16.mxu0 %v381_v20  ;;  %401 = vpow2.f32 %v330_v33  ;;  %v30_v7 = vld [vmem:[%s682_s0 + $0x1] sm:$0x1]  ;;  %v31_v8 = vld [vmem:[%s682_s0 + $0x3] sm:$0x1]  ;;  %v32_v18 = vld [vmem:[%s682_s0 + $0x5] sm:$0x1] }
   0xf   :  { %403 = vpow2.f32 %v331_v34  ;;  %v33_v23 = vld [vmem:[%s682_s0 + $0x7] sm:$0x1]  ;;  %v34_v25 = vld [vmem:[%s682_s0 + $0x9] sm:$0x1]  ;;  %v35_v34 = vld [vmem:[%s682_s0 + $0xb] sm:$0x1] }
  0x10   :  { %v386_v38 = vpop.eup %385  ;;  %405 = vpow2.f32 %v332_v35 }
  0x11   :  { %384 = vmatpush3.bf16.msra.mxu0 %v381_v20  ;;  %v388_v39 = vpop.eup %387  ;;  %v94_v40 = vadd.f32 1.0, %v386_v38  ;;  %407 = vpow2.f32 %v333_v36 }
  0x12   :  { %v390_v41 = vpop.eup %389  ;;  %v95_v42 = vadd.f32 1.0, %v388_v39  ;;  %409 = vpow2.f32 %v334_v37  ;;  %v36_v37 = vld [vmem:[%s682_s0 + $0xd] sm:$0x1] }
  0x13   :  { %v392_v43 = vpop.eup %391  ;;  %v96_v44 = vadd.f32 1.0, %v390_v41  ;;  %411 = vrcp.f32 %v94_v40  ;;  %v37_v41 = vld [vmem:[%s682_s0 + $0xf] sm:$0x1] }
  0x14   :  { %v394_v45 = vpop.eup %393  ;;  %v97_v46 = vadd.f32 1.0, %v392_v43  ;;  %413 = vrcp.f32 %v95_v42 }
  0x15   :  { %v396_v48 = vpop.eup %395  ;;  %v98_v49 = vadd.f32 1.0, %v394_v45  ;;  %415 = vrcp.f32 %v96_v44 }
  0x16   :  { %v398_v51 = vpop.eup %397  ;;  %v99_v52 = vadd.f32 1.0, %v396_v48  ;;  %417 = vrcp.f32 %v97_v46 }
  0x17   :  { %v400_v54 = vpop.eup %399  ;;  %v100_v55 = vadd.f32 1.0, %v398_v51  ;;  %419 = vrcp.f32 %v98_v49 }
  0x18   :  { %v402_v57 = vpop.eup %401  ;;  %v101_v58 = vadd.f32 1.0, %v400_v54  ;;  %421 = vrcp.f32 %v99_v52 }
  0x19   :  { %v404_v60 = vpop.eup %403  ;;  %423 = vrcp.f32 %v100_v55  ;;  %v102_v63 = vadd.f32 1.0, %v402_v57 }
  0x1a   :  { %v406_v62 = vpop.eup %405  ;;  %425 = vrcp.f32 %v101_v58  ;;  %v103_v1 = vadd.f32 1.0, %v404_v60 }
  0x1b   :  { %v408_v0 = vpop.eup %407  ;;  %427 = vpow2.f32 %v335_v56  ;;  %v104_v3 = vadd.f32 1.0, %v406_v62 }
  0x1c   :  { %v410_v2 = vpop.eup %409  ;;  %429 = vpow2.f32 %v336_v59  ;;  %v105_v5 = vadd.f32 1.0, %v408_v0 }
  0x1d   :  { %v412_v4 = vpop.eup %411  ;;  %431 = vpow2.f32 %v337_v61  ;;  %v106_v13 = vadd.f32 1.0, %v410_v2  ;;  %v38_v2 = vld [vmem:[%s682_s0 + $0x11] sm:$0x1] }
  0x1e   :  { %v414_v6 = vpop.eup %413  ;;  %v142_v12 = vmul.f32 %v412_v4, %v490_v9  ;;  %433 = vrcp.f32 %v102_v63 }
  0x1f   :  { %v416_v17 = vpop.eup %415  ;;  %v143_v19 = vmul.f32 %v414_v6, %v495_v10  ;;  %435 = vrcp.f32 %v103_v1 }
  0x20   :  { %v418_v20 = vpop.eup %417  ;;  %v144_v9 = vmul.f32 %v416_v17, %v500_v11  ;;  %437 = vrcp.f32 %v104_v3  ;;  %v158_v26 = vmul.f32 %v142_v12, %v30_v7  ;;  %v39_v3 = vld [vmem:[%s682_s0 + $0x13] sm:$0x1]  ;;  %v40_v7 = vld [vmem:[%s682_s0 + $0x15] sm:$0x1]  ;;  %v41_v17 = vld [vmem:[%s682_s0 + $0x17] sm:$0x1] }
  0x21   :  { %v420_v24 = vpop.eup %419  ;;  %v145_v10 = vmul.f32 %v418_v20, %v511_v14  ;;  %v159_v27 = vmul.f32 %v143_v19, %v31_v8  ;;  %439 = vrcp.f32 %v105_v5  ;;  %v42_v19 = vld [vmem:[%s682_s0 + $0x19] sm:$0x1] }
  0x22   :  { %v422_v33 = vpop.eup %421  ;;  %v146_v11 = vmul.f32 %v420_v24, %v516_v15  ;;  %v160_v35 = vmul.f32 %v144_v9, %v32_v18  ;;  %441 = vrcp.f32 %v106_v13 }
  0x23   :  { %v424_v36 = vpop.eup %423  ;;  %v147_v14 = vmul.f32 %v422_v33, %v521_v16  ;;  %v161_v38 = vmul.f32 %v145_v10, %v33_v23  ;;  %v200_v39 = vrot.slane %v159_v27, 7 }
  0x24   :  { %v426_v40 = vpop.eup %425  ;;  %v148_v15 = vmul.f32 %v424_v36, %v529_v21  ;;  %v162_v42 = vmul.f32 %v146_v11, %v34_v25  ;;  %v203_v43 = vrot.slane %v160_v35, 6  ;;  %v43_v35 = vld [vmem:[%s682_s0 + $0x1b] sm:$0x1] }
  0x25   :  { %v428_v44 = vpop.eup %427  ;;  %v149_v45 = vmul.f32 %v426_v40, %v534_v22  ;;  %v163_v46 = vmul.f32 %v147_v14, %v35_v34  ;;  %v202_v48 = vsel %vm201_vm0, %v200_v39, %v158_v26  ;;  %v206_v16 = vrot.slane %v161_v38, 5  ;;  %v45_v39 = vld [vmem:[%s682_s0 + $0x1f] sm:$0x1] }
  0x26   :  { %v430_v49 = vpop.eup %429  ;;  %v164_v51 = vmul.f32 %v148_v15, %v36_v37  ;;  %v205_v52 = vsel %vm204_vm1, %v203_v43, %v202_v48  ;;  %v209_v54 = vrot.slane %v162_v42, 4  ;;  %v107_v55 = vadd.f32 1.0, %v428_v44 }
  0x27   :  { %v432_v56 = vpop.eup %431  ;;  %v165_v57 = vmul.f32 %v149_v45, %v37_v41  ;;  %v208_v21 = vsel %vm207_vm2, %v206_v16, %v205_v52  ;;  %v212_v58 = vrot.slane %v163_v46, 3  ;;  %v108_v59 = vadd.f32 1.0, %v430_v49 }
  0x28   :  { %v434_v60 = vpop.eup %433  ;;  %v211_v61 = vsel %vm210_vm3, %v209_v54, %v208_v21  ;;  %v215_v22 = vrot.slane %v164_v51, 2  ;;  %v109_v62 = vadd.f32 1.0, %v432_v56  ;;  %443 = vrcp.f32 %v107_v55 }
  0x29   :  { %v436_v63 = vpop.eup %435  ;;  %v214_v0 = vsel %vm213_vm4, %v212_v58, %v211_v61  ;;  %v218_v1 = vrot.slane %v165_v57, 1  ;;  %445 = vrcp.f32 %v108_v59  ;;  %v150_v4 = vmul.f32 %v434_v60, %v544_v28 }
  0x2a   :  { %v438_v5 = vpop.eup %437  ;;  %v217_v6 = vsel %vm216_vm5, %v215_v22, %v214_v0  ;;  %447 = vrcp.f32 %v109_v62  ;;  %v151_v8 = vmul.f32 %v436_v63, %v549_v29 }
  0x2b   :  { %v440_v12 = vpop.eup %439  ;;  %v220_v13 = vsel %vm219_vm6, %v218_v1, %v217_v6  ;;  %v152_v18 = vmul.f32 %v438_v5, %v554_v30  ;;  %v166_v23 = vmul.f32 %v150_v4, %v38_v2 }
  0x2c   :  { %v442_v28 = vpop.eup %441  ;;  %366 = vmatprep.mubr.msk.f32.mxu0 %vm235_vm7, %v220_v13  ;;  %v153_v20 = vmul.f32 %v440_v12, %v559_v31  ;;  %v167_v29 = vmul.f32 %v151_v8, %v39_v3 }
  0x2d   :  { %v154_v9 = vmul.f32 %v442_v28, %v564_v32  ;;  %v168_v24 = vmul.f32 %v152_v18, %v40_v7  ;;  %v44_v32 = vld [vmem:[%s682_s0 + $0x1d] sm:$0x1] }
  0x2e   :  { %v169_v25 = vmul.f32 %v153_v20, %v41_v17  ;;  %v221_v10 = vrot.slane %v167_v29, 7 }
  0x2f   :  { %v170_v26 = vmul.f32 %v154_v9, %v42_v19  ;;  %v223_v27 = vrot.slane %v168_v24, 6 }
  0x30   :  { %v222_v30 = vsel %vm201_vm0, %v221_v10, %v166_v23  ;;  %v225_v33 = vrot.slane %v169_v25, 5 }
  0x31   :  { %v224_v34 = vsel %vm204_vm1, %v223_v27, %v222_v30  ;;  %v227_v31 = vrot.slane %v170_v26, 4 }
  0x32   :  { %v444_v11 = vpop.eup %443  ;;  %v226_v14 = vsel %vm207_vm2, %v225_v33, %v224_v34 }
  0x33   :  { %v446_v36 = vpop.eup %445  ;;  %v155_v37 = vmul.f32 %v444_v11, %v574_v47  ;;  %v228_v43 = vsel %vm210_vm3, %v227_v31, %v226_v14 }
  0x34   :  { %v448_v38 = vpop.eup %447  ;;  %v156_v40 = vmul.f32 %v446_v36, %v579_v50  ;;  %v183_v50 = vld [vmem:[%s683_s2 + $0x8] sm:$0xff] }
  0x35   :  { %v157_v41 = vmul.f32 %v448_v38, %v584_v53  ;;  %v171_v15 = vmul.f32 %v155_v37, %v43_v35  ;;  %v182_v53 = vld [vmem:[%s683_s2] sm:$0xff] }
  0x36   :  { %v172_v42 = vmul.f32 %v156_v40, %v44_v32 }
  0x37   :  { %v173_v44 = vmul.f32 %v157_v41, %v45_v39  ;;  %v229_v45 = vrot.slane %v171_v15, 3 }
  0x38   :  { %v231_v46 = vrot.slane %v172_v42, 2 }
  0x39   :  { %v230_v47 = vsel %vm213_vm4, %v229_v45, %v228_v43  ;;  %v233_v48 = vrot.slane %v173_v44, 1 }
  0x3a   :  { %v232_v16 = vsel %vm216_vm5, %v231_v46, %v230_v47 }
  0x3b   :  { %v234_v49 = vsel %vm219_vm6, %v233_v48, %v232_v16 }
  0x3c   :  { %367 = vmatmul.mubr.msk.f32.vlgmr.msra.gmra.mrb[0].mxu0 %vm235_vm7, %v234_v49 }
 0x10f   :  { %v368_v51 = vpop.f32.mrb[0].mxu0 }
 0x110   :  { %v312_v52 = vadd.f32 %v368_v51, %v183_v50  ;;  %v306_v54 = vpop.f32.mrb[1].mxu0 }
 0x111   :  { %v307_v55 = vadd.f32 %v306_v54, %v182_v53 }
 0x112   :  { %317 = vst.msk [vmem:[%s684_s3 + $0x8] sm:$0xff] %vm315_vm8, %v312_v52 }
 0x113   :  { %316 = vst.msk [vmem:[%s684_s3] sm:$0xff] %vm315_vm8, %v307_v55 }

</bundles_post_ra>
